<compile_context>
chip_gen: v5e
topology: v5e:2x2
jax: 0.10.0
libtpu: 0.0.40
codegen_flags: <defaults>
</compile_context>

<pallas_src>
import jax
import jax.numpy as jnp
from jax.experimental import pallas as pl
from jax.experimental.pallas import tpu as pltpu


def _relu(x):
    return jnp.maximum(x, 0.0)


def _leaky_relu(x, slope=0.2):
    return jnp.where(x > 0, x, slope * x)


def make_critic_kernel(n_agents, n_gat):
    """Fused Critic forward kernel for a tile of TILE_B graphs."""
    bf16 = jnp.bfloat16

    def kernel(idx_ref, x_ref, wenc_ref, benc_ref, *rest):
        out_ref = rest[-1]
        rest = rest[:-1]
        gat_refs = rest[:4 * n_gat]
        w1_refs = rest[4 * n_gat:4 * n_gat + 1 + n_gat]
        b1_ref, w2t_ref, b2_ref = rest[4 * n_gat + 1 + n_gat:]

        index = idx_ref[0]                       # dynamic agent index (SMEM scalar)

        def sel(a):                              # 1.0 iff a == index (traced scalar)
            return (index == a).astype(jnp.float32)

        w_enc = wenc_ref[...]                    # (F, E)  bf16
        b_enc = benc_ref[...]                    # (1, E)  f32

        # ---------------- EncoderByType: shared Linear + ReLU ----------------
        h = []
        for a in range(n_agents):
            xa = x_ref[a].astype(bf16)           # (TILE_B, F)
            ha = jnp.dot(xa, w_enc, preferred_element_type=jnp.float32) + b_enc
            h.append(_relu(ha))                  # (TILE_B, E) f32

        def gather_index(slabs):                 # rows of the `index` agent
            acc = slabs[0] * sel(0)
            for a in range(1, n_agents):
                acc = acc + slabs[a] * sel(a)
            return acc

        enc_idx = gather_index(h)                # (TILE_B, E)

        # ---------------- GATModule (single head, self loops) ----------------
        cur = h
        gat_idx_outs = []
        for l in range(n_gat):
            w_ref, asrc_ref, adst_ref, bg_ref = gat_refs[4 * l:4 * l + 4]
            W = w_ref[...]                       # (prev, O) bf16
            a_src = asrc_ref[...]                # (1, O) f32
            a_dst = adst_ref[...]                # (1, O) f32
            bg = bg_ref[...]                     # (1, O) f32

            Wh = [jnp.dot(cur[a].astype(bf16), W,
                          preferred_element_type=jnp.float32)
                  for a in range(n_agents)]      # (TILE_B, O) f32 each

            # attention scores for edges a -> index : VPU mul + lane reduce
            s_src = [jnp.sum(Wh[a] * a_src, axis=-1, keepdims=True)
                     for a in range(n_agents)]   # (TILE_B, 1)
            Wh_idx = gather_index(Wh)            # (TILE_B, O)
            s_dst = jnp.sum(Wh_idx * a_dst, axis=-1, keepdims=True)  # (TILE_B, 1)

            # softmax over the n_agents sources of each graph's index node
            e = [_leaky_relu(s_src[a] + s_dst) for a in range(n_agents)]
            m = e[0]
            for a in range(1, n_agents):
                m = jnp.maximum(m, e[a])
            p = [jnp.exp(e[a] - m) for a in range(n_agents)]
            denom = p[0]
            for a in range(1, n_agents):
                denom = denom + p[a]
            inv = pl.reciprocal(denom, approx=True)                   # (TILE_B, 1)

            out_idx = (p[0] * inv) * Wh[0]
            for a in range(1, n_agents):
                out_idx = out_idx + (p[a] * inv) * Wh[a]
            out_idx = out_idx + bg                                    # (TILE_B, O)

            new_cur = []
            for a in range(n_agents):
                s = sel(a)
                # index node gets the attention aggregate; others: self loop only
                node = out_idx * s + (Wh[a] + bg) * (1.0 - s)
                new_cur.append(_relu(node))                           # act_comms
            cur = new_cur
            gat_idx_outs.append(_relu(out_idx))   # full receptive field

        # ------------- CriticLayer: row-split W1 -> ReLU -> value -------------
        acc = jnp.dot(enc_idx.astype(bf16), w1_refs[0][...],
                      preferred_element_type=jnp.float32)
        for l in range(n_gat):
            acc = acc + jnp.dot(gat_idx_outs[l].astype(bf16), w1_refs[1 + l][...],
                                preferred_element_type=jnp.float32)
        h1 = _relu(acc + b1_ref[...])                                 # (TILE_B, H)
        # final Linear(H -> 1): VPU mul + lane reduce (w2t is (1, H))
        vals = jnp.sum(h1 * w2t_ref[...], axis=-1, keepdims=True) + b2_ref[...]
        out_ref[...] = vals                                           # (TILE_B, 1)

    return kernel


def critic_forward(state, action, index, params, *, tile_b=256):
    """state: (bs, n_agents, S), action: (bs, n_agents, A) -> values (bs, 1)."""
    bs, n_agents, _ = state.shape
    x = jnp.concatenate([state, action], axis=2).astype(jnp.float32)  # (bs, A, F)
    feat_dim = x.shape[-1]
    n_gat = len(params["gat"])

    # --- batch tiling: blocks of tile_b graphs, padded if necessary ---
    if bs <= tile_b:
        tb, bs_p = bs, bs
    else:
        tb = max(8, (tile_b // 8) * 8)
        bs_p = ((bs + tb - 1) // tb) * tb
    if bs_p != bs:
        x = jnp.pad(x, ((0, bs_p - bs), (0, 0), (0, 0)))
    n_tiles = bs_p // tb

    # agent-major layout so each agent is a clean (TILE_B, F) 2-D slab
    xT = jnp.transpose(x, (1, 0, 2))                                  # (A, bs_p, F)

    bf16, f32 = jnp.bfloat16, jnp.float32
    w_enc = params["W_enc"].astype(bf16)
    b_enc = params["b_enc"].astype(f32)
    gat_flat = []
    for (W, a_src, a_dst, bg) in params["gat"]:
        gat_flat += [W.astype(bf16), a_src.astype(f32),
                     a_dst.astype(f32), bg.astype(f32)]

    # row-split W1 (enc rows | gat layer rows...) -> no in-kernel concat
    E = params["W_enc"].shape[1]
    sizes = [W.shape[1] for (W, _, _, _) in params["gat"]]
    offs = [0, E]
    for s in sizes:
        offs.append(offs[-1] + s)
    w1_parts = [params["W1"][offs[i]:offs[i + 1]].astype(bf16)
                for i in range(len(offs) - 1)]
    b1 = params["b1"].astype(f32)
    w2t = params["W2"].T.astype(f32)              # (1, H): applied as VPU reduce
    b2 = params["b2"].astype(f32)

    idx = jnp.asarray([index], dtype=jnp.int32)   # scalar-prefetch operand

    def const_spec(arr):                          # resident weights: DMA'd once
        return pl.BlockSpec(arr.shape, lambda g, idx_ref: (0, 0))

    in_specs = [pl.BlockSpec((n_agents, tb, feat_dim), lambda g, idx_ref: (0, g, 0))]
    in_specs += [const_spec(w_enc), const_spec(b_enc)]
    in_specs += [const_spec(t) for t in gat_flat]
    in_specs += [const_spec(t) for t in w1_parts]
    in_specs += [const_spec(b1), const_spec(w2t), const_spec(b2)]

    grid_spec = pltpu.PrefetchScalarGridSpec(
        num_scalar_prefetch=1,
        grid=(n_tiles,),
        in_specs=in_specs,
        out_specs=pl.BlockSpec((tb, 1), lambda g, idx_ref: (g, 0)),
    )

    fn = pl.pallas_call(
        make_critic_kernel(n_agents, n_gat),
        out_shape=jax.ShapeDtypeStruct((bs_p, 1), jnp.float32),
        grid_spec=grid_spec,
        compiler_params=pltpu.CompilerParams(
            dimension_semantics=("parallel",),
            vmem_limit_bytes=32 * 1024 * 1024,
        ),
    )
    out = fn(idx, xT, w_enc, b_enc, *gat_flat, *w1_parts, b1, w2t, b2)
    return out[:bs]


def critic_ref(state, action, index, params):
    """Pure-JAX f32 reference of the same forward semantics (verification)."""
    x = jnp.concatenate([state, action], axis=2).astype(jnp.float32)
    h = _relu(jnp.einsum("bnf,fe->bne", x, params["W_enc"]) + params["b_enc"])
    enc_idx = h[:, index]
    cur = h
    outs = []
    for (W, a_src, a_dst, bg) in params["gat"]:
        Wh = jnp.einsum("bni,io->bno", cur, W)
        s_src = jnp.sum(Wh * a_src, axis=-1)               # (bs, n)
        s_dst = jnp.sum(Wh[:, index] * a_dst, axis=-1)     # (bs,)
        e = _leaky_relu(s_src + s_dst[:, None])
        alpha = jax.nn.softmax(e, axis=-1)
        out_idx = jnp.einsum("bn,bno->bo", alpha, Wh) + bg
        out_all = Wh + bg
        node_out = out_all.at[:, index].set(out_idx)
        cur = _relu(node_out)
        outs.append(_relu(out_idx))
    feat = jnp.concatenate([enc_idx] + outs, axis=-1)
    h1 = _relu(feat @ params["W1"] + params["b1"])
    return h1 @ params["W2"] + params["b2"]


if __name__ == "__main__":
    bs, n_agents = 16, 4
    state_dim, action_dim = 10, 2
    F = state_dim + action_dim          # features_by_node_class[0]
    E = 32                              # encoding_output_size
    gat_sizes = [32, 32]                # graph_module_sizes
    H = 64                              # action_hidden_size

    keys = jax.random.split(jax.random.PRNGKey(0), 16)

    def init(k, shape, scale=0.1):
        return (scale * jax.random.normal(k, shape)).astype(jnp.float32)

    params = {
        "W_enc": init(keys[0], (F, E)),
        "b_enc": init(keys[1], (1, E)),
        "W1": init(keys[2], (E + sum(gat_sizes), H)),
        "b1": init(keys[3], (1, H)),
        "W2": init(keys[4], (H, 1)),
        "b2": init(keys[5], (1, 1)),
        "gat": [],
    }
    prev, ki = E, 6
    for size in gat_sizes:
        params["gat"].append((
            init(keys[ki], (prev, size)),        # GATConv lin weight
            init(keys[ki + 1], (1, size)),       # att_src
            init(keys[ki + 2], (1, size)),       # att_dst
            init(keys[ki + 3], (1, size)),       # bias
        ))
        prev, ki = size, ki + 4

    state = jax.random.normal(jax.random.PRNGKey(1), (bs, n_agents, state_dim),
                              dtype=jnp.float32)
    action = jax.random.normal(jax.random.PRNGKey(2), (bs, n_agents, action_dim),
                               dtype=jnp.float32)

    # tile_b=8 -> grid of 2 batch tiles; the same compiled kernel handles
    # different `index` values thanks to scalar prefetch.
    for index in (1, 3):
        out = jax.block_until_ready(
            critic_forward(state, action, index, params, tile_b=8))
        ref = critic_ref(state, action, index, params)
        assert out.shape == (bs, 1)
        err = float(jnp.max(jnp.abs(out - ref)))
        assert jnp.allclose(out, ref, rtol=2e-2, atol=2e-2), \
            f"mismatch at index={index}: max abs err {err}"
    print("KERNEL_OK")
</pallas_src>

<mosaic_0001>
module attributes {stable_mosaic.version = 11 : i64} {
  func.func @kernel(%arg0: i32, %arg1: memref<1xi32, #tpu.memory_space<smem>>, %arg2: memref<4x8x12xf32, #tpu.memory_space<vmem>>, %arg3: memref<12x32xbf16, #tpu.memory_space<vmem>>, %arg4: memref<1x32xf32, #tpu.memory_space<vmem>>, %arg5: memref<32x32xbf16, #tpu.memory_space<vmem>>, %arg6: memref<1x32xf32, #tpu.memory_space<vmem>>, %arg7: memref<1x32xf32, #tpu.memory_space<vmem>>, %arg8: memref<1x32xf32, #tpu.memory_space<vmem>>, %arg9: memref<32x32xbf16, #tpu.memory_space<vmem>>, %arg10: memref<1x32xf32, #tpu.memory_space<vmem>>, %arg11: memref<1x32xf32, #tpu.memory_space<vmem>>, %arg12: memref<1x32xf32, #tpu.memory_space<vmem>>, %arg13: memref<32x64xbf16, #tpu.memory_space<vmem>>, %arg14: memref<32x64xbf16, #tpu.memory_space<vmem>>, %arg15: memref<32x64xbf16, #tpu.memory_space<vmem>>, %arg16: memref<1x64xf32, #tpu.memory_space<vmem>>, %arg17: memref<1x64xf32, #tpu.memory_space<vmem>>, %arg18: memref<1x1xf32, #tpu.memory_space<vmem>>, %arg19: memref<8x1xf32, #tpu.memory_space<vmem>>) attributes {dimension_semantics = [#tpu.dimension_semantics<parallel>], iteration_bounds = array<i64: 2>, scalar_prefetch = 1 : i64, scratch_operands = 0 : i64, tpu.core_type = #tpu.core_type<tc>, window_params = [{transform_indices = @transform_0, window_bounds = array<i64: 4, 8, 12>}, {pipeline_mode = #tpu.pipeline_mode<synchronous>, transform_indices = @transform_1, window_bounds = array<i64: 12, 32>}, {pipeline_mode = #tpu.pipeline_mode<synchronous>, transform_indices = @transform_2, window_bounds = array<i64: 1, 32>}, {pipeline_mode = #tpu.pipeline_mode<synchronous>, transform_indices = @transform_3, window_bounds = array<i64: 32, 32>}, {pipeline_mode = #tpu.pipeline_mode<synchronous>, transform_indices = @transform_4, window_bounds = array<i64: 1, 32>}, {pipeline_mode = #tpu.pipeline_mode<synchronous>, transform_indices = @transform_5, window_bounds = array<i64: 1, 32>}, {pipeline_mode = #tpu.pipeline_mode<synchronous>, transform_indices = @transform_6, window_bounds = array<i64: 1, 32>}, {pipeline_mode = #tpu.pipeline_mode<synchronous>, transform_indices = @transform_7, window_bounds = array<i64: 32, 32>}, {pipeline_mode = #tpu.pipeline_mode<synchronous>, transform_indices = @transform_8, window_bounds = array<i64: 1, 32>}, {pipeline_mode = #tpu.pipeline_mode<synchronous>, transform_indices = @transform_9, window_bounds = array<i64: 1, 32>}, {pipeline_mode = #tpu.pipeline_mode<synchronous>, transform_indices = @transform_10, window_bounds = array<i64: 1, 32>}, {pipeline_mode = #tpu.pipeline_mode<synchronous>, transform_indices = @transform_11, window_bounds = array<i64: 32, 64>}, {pipeline_mode = #tpu.pipeline_mode<synchronous>, transform_indices = @transform_12, window_bounds = array<i64: 32, 64>}, {pipeline_mode = #tpu.pipeline_mode<synchronous>, transform_indices = @transform_13, window_bounds = array<i64: 32, 64>}, {pipeline_mode = #tpu.pipeline_mode<synchronous>, transform_indices = @transform_14, window_bounds = array<i64: 1, 64>}, {pipeline_mode = #tpu.pipeline_mode<synchronous>, transform_indices = @transform_15, window_bounds = array<i64: 1, 64>}, {pipeline_mode = #tpu.pipeline_mode<synchronous>, transform_indices = @transform_16, window_bounds = array<i64: 1, 1>}, {transform_indices = @transform_17, window_bounds = array<i64: 8, 1>}]} {
    %c0 = arith.constant 0 : index
    %0 = memref.load %arg1[%c0] : memref<1xi32, #tpu.memory_space<smem>>
    %c0_0 = arith.constant 0 : index
    %c0_1 = arith.constant 0 : index
    %1 = vector.load %arg3[%c0_0, %c0_1] : memref<12x32xbf16, #tpu.memory_space<vmem>>, vector<12x32xbf16>
    %c0_2 = arith.constant 0 : index
    %c0_3 = arith.constant 0 : index
    %2 = vector.load %arg4[%c0_2, %c0_3] : memref<1x32xf32, #tpu.memory_space<vmem>>, vector<1x32xf32>
    %c0_4 = arith.constant 0 : index
    %c0_5 = arith.constant 0 : index
    %c0_6 = arith.constant 0 : index
    %3 = vector.load %arg2[%c0_4, %c0_5, %c0_6] : memref<4x8x12xf32, #tpu.memory_space<vmem>>, vector<1x8x12xf32>
    %4 = vector.shape_cast %3 : vector<1x8x12xf32> to vector<8x12xf32>
    %5 = arith.truncf %4 : vector<8x12xf32> to vector<8x12xbf16>
    %cst = arith.constant dense<0.000000e+00> : vector<8x32xf32>
    %6 = tpu.matmul %5, %1, %cst {dimension_numbers = #tpu.dot_dimension_numbers<[1], [0], [0], [1], [0, 0, 1, 1], [], []>} : vector<8x12xbf16>, vector<12x32xbf16>, vector<8x32xf32> -> vector<8x32xf32>
    %7 = vector.broadcast %2 : vector<1x32xf32> to vector<8x32xf32>
    %8 = arith.addf %6, %7 : vector<8x32xf32>
    %cst_7 = arith.constant 0.000000e+00 : f32
    %9 = vector.broadcast %cst_7 : f32 to vector<8x32xf32>
    %10 = arith.maximumf %8, %9 : vector<8x32xf32>
    %c1 = arith.constant 1 : index
    %c0_8 = arith.constant 0 : index
    %c0_9 = arith.constant 0 : index
    %11 = vector.load %arg2[%c1, %c0_8, %c0_9] : memref<4x8x12xf32, #tpu.memory_space<vmem>>, vector<1x8x12xf32>
    %12 = vector.shape_cast %11 : vector<1x8x12xf32> to vector<8x12xf32>
    %13 = arith.truncf %12 : vector<8x12xf32> to vector<8x12xbf16>
    %cst_10 = arith.constant dense<0.000000e+00> : vector<8x32xf32>
    %14 = tpu.matmul %13, %1, %cst_10 {dimension_numbers = #tpu.dot_dimension_numbers<[1], [0], [0], [1], [0, 0, 1, 1], [], []>} : vector<8x12xbf16>, vector<12x32xbf16>, vector<8x32xf32> -> vector<8x32xf32>
    %15 = vector.broadcast %2 : vector<1x32xf32> to vector<8x32xf32>
    %16 = arith.addf %14, %15 : vector<8x32xf32>
    %cst_11 = arith.constant 0.000000e+00 : f32
    %17 = vector.broadcast %cst_11 : f32 to vector<8x32xf32>
    %18 = arith.maximumf %16, %17 : vector<8x32xf32>
    %c2 = arith.constant 2 : index
    %c0_12 = arith.constant 0 : index
    %c0_13 = arith.constant 0 : index
    %19 = vector.load %arg2[%c2, %c0_12, %c0_13] : memref<4x8x12xf32, #tpu.memory_space<vmem>>, vector<1x8x12xf32>
    %20 = vector.shape_cast %19 : vector<1x8x12xf32> to vector<8x12xf32>
    %21 = arith.truncf %20 : vector<8x12xf32> to vector<8x12xbf16>
    %cst_14 = arith.constant dense<0.000000e+00> : vector<8x32xf32>
    %22 = tpu.matmul %21, %1, %cst_14 {dimension_numbers = #tpu.dot_dimension_numbers<[1], [0], [0], [1], [0, 0, 1, 1], [], []>} : vector<8x12xbf16>, vector<12x32xbf16>, vector<8x32xf32> -> vector<8x32xf32>
    %23 = vector.broadcast %2 : vector<1x32xf32> to vector<8x32xf32>
    %24 = arith.addf %22, %23 : vector<8x32xf32>
    %cst_15 = arith.constant 0.000000e+00 : f32
    %25 = vector.broadcast %cst_15 : f32 to vector<8x32xf32>
    %26 = arith.maximumf %24, %25 : vector<8x32xf32>
    %c3 = arith.constant 3 : index
    %c0_16 = arith.constant 0 : index
    %c0_17 = arith.constant 0 : index
    %27 = vector.load %arg2[%c3, %c0_16, %c0_17] : memref<4x8x12xf32, #tpu.memory_space<vmem>>, vector<1x8x12xf32>
    %28 = vector.shape_cast %27 : vector<1x8x12xf32> to vector<8x12xf32>
    %29 = arith.truncf %28 : vector<8x12xf32> to vector<8x12xbf16>
    %cst_18 = arith.constant dense<0.000000e+00> : vector<8x32xf32>
    %30 = tpu.matmul %29, %1, %cst_18 {dimension_numbers = #tpu.dot_dimension_numbers<[1], [0], [0], [1], [0, 0, 1, 1], [], []>} : vector<8x12xbf16>, vector<12x32xbf16>, vector<8x32xf32> -> vector<8x32xf32>
    %31 = vector.broadcast %2 : vector<1x32xf32> to vector<8x32xf32>
    %32 = arith.addf %30, %31 : vector<8x32xf32>
    %cst_19 = arith.constant 0.000000e+00 : f32
    %33 = vector.broadcast %cst_19 : f32 to vector<8x32xf32>
    %34 = arith.maximumf %32, %33 : vector<8x32xf32>
    %c0_i32 = arith.constant 0 : i32
    %35 = arith.cmpi eq, %0, %c0_i32 : i32
    %36 = arith.extui %35 : i1 to i32
    %37 = arith.sitofp %36 : i32 to f32
    %38 = vector.broadcast %37 : f32 to vector<8x32xf32>
    %39 = arith.mulf %10, %38 : vector<8x32xf32>
    %c1_i32 = arith.constant 1 : i32
    %40 = arith.cmpi eq, %0, %c1_i32 : i32
    %41 = arith.extui %40 : i1 to i32
    %42 = arith.sitofp %41 : i32 to f32
    %43 = vector.broadcast %42 : f32 to vector<8x32xf32>
    %44 = arith.mulf %18, %43 : vector<8x32xf32>
    %45 = arith.addf %39, %44 : vector<8x32xf32>
    %c2_i32 = arith.constant 2 : i32
    %46 = arith.cmpi eq, %0, %c2_i32 : i32
    %47 = arith.extui %46 : i1 to i32
    %48 = arith.sitofp %47 : i32 to f32
    %49 = vector.broadcast %48 : f32 to vector<8x32xf32>
    %50 = arith.mulf %26, %49 : vector<8x32xf32>
    %51 = arith.addf %45, %50 : vector<8x32xf32>
    %c3_i32 = arith.constant 3 : i32
    %52 = arith.cmpi eq, %0, %c3_i32 : i32
    %53 = arith.extui %52 : i1 to i32
    %54 = arith.sitofp %53 : i32 to f32
    %55 = vector.broadcast %54 : f32 to vector<8x32xf32>
    %56 = arith.mulf %34, %55 : vector<8x32xf32>
    %57 = arith.addf %51, %56 : vector<8x32xf32>
    %c0_20 = arith.constant 0 : index
    %c0_21 = arith.constant 0 : index
    %58 = vector.load %arg5[%c0_20, %c0_21] : memref<32x32xbf16, #tpu.memory_space<vmem>>, vector<32x32xbf16>
    %c0_22 = arith.constant 0 : index
    %c0_23 = arith.constant 0 : index
    %59 = vector.load %arg6[%c0_22, %c0_23] : memref<1x32xf32, #tpu.memory_space<vmem>>, vector<1x32xf32>
    %c0_24 = arith.constant 0 : index
    %c0_25 = arith.constant 0 : index
    %60 = vector.load %arg7[%c0_24, %c0_25] : memref<1x32xf32, #tpu.memory_space<vmem>>, vector<1x32xf32>
    %c0_26 = arith.constant 0 : index
    %c0_27 = arith.constant 0 : index
    %61 = vector.load %arg8[%c0_26, %c0_27] : memref<1x32xf32, #tpu.memory_space<vmem>>, vector<1x32xf32>
    %62 = arith.truncf %10 : vector<8x32xf32> to vector<8x32xbf16>
    %cst_28 = arith.constant dense<0.000000e+00> : vector<8x32xf32>
    %63 = tpu.matmul %62, %58, %cst_28 {dimension_numbers = #tpu.dot_dimension_numbers<[1], [0], [0], [1], [0, 0, 1, 1], [], []>} : vector<8x32xbf16>, vector<32x32xbf16>, vector<8x32xf32> -> vector<8x32xf32>
    %64 = arith.truncf %18 : vector<8x32xf32> to vector<8x32xbf16>
    %cst_29 = arith.constant dense<0.000000e+00> : vector<8x32xf32>
    %65 = tpu.matmul %64, %58, %cst_29 {dimension_numbers = #tpu.dot_dimension_numbers<[1], [0], [0], [1], [0, 0, 1, 1], [], []>} : vector<8x32xbf16>, vector<32x32xbf16>, vector<8x32xf32> -> vector<8x32xf32>
    %66 = arith.truncf %26 : vector<8x32xf32> to vector<8x32xbf16>
    %cst_30 = arith.constant dense<0.000000e+00> : vector<8x32xf32>
    %67 = tpu.matmul %66, %58, %cst_30 {dimension_numbers = #tpu.dot_dimension_numbers<[1], [0], [0], [1], [0, 0, 1, 1], [], []>} : vector<8x32xbf16>, vector<32x32xbf16>, vector<8x32xf32> -> vector<8x32xf32>
    %68 = arith.truncf %34 : vector<8x32xf32> to vector<8x32xbf16>
    %cst_31 = arith.constant dense<0.000000e+00> : vector<8x32xf32>
    %69 = tpu.matmul %68, %58, %cst_31 {dimension_numbers = #tpu.dot_dimension_numbers<[1], [0], [0], [1], [0, 0, 1, 1], [], []>} : vector<8x32xbf16>, vector<32x32xbf16>, vector<8x32xf32> -> vector<8x32xf32>
    %70 = vector.broadcast %59 : vector<1x32xf32> to vector<8x32xf32>
    %71 = arith.mulf %63, %70 : vector<8x32xf32>
    %cst_32 = arith.constant dense<0.000000e+00> : vector<8xf32>
    %72 = vector.multi_reduction <add>, %71, %cst_32 [1] : vector<8x32xf32> to vector<8xf32>
    %73 = vector.shape_cast %72 : vector<8xf32> to vector<8x1xf32>
    %74 = vector.broadcast %59 : vector<1x32xf32> to vector<8x32xf32>
    %75 = arith.mulf %65, %74 : vector<8x32xf32>
    %cst_33 = arith.constant dense<0.000000e+00> : vector<8xf32>
    %76 = vector.multi_reduction <add>, %75, %cst_33 [1] : vector<8x32xf32> to vector<8xf32>
    %77 = vector.shape_cast %76 : vector<8xf32> to vector<8x1xf32>
    %78 = vector.broadcast %59 : vector<1x32xf32> to vector<8x32xf32>
    %79 = arith.mulf %67, %78 : vector<8x32xf32>
    %cst_34 = arith.constant dense<0.000000e+00> : vector<8xf32>
    %80 = vector.multi_reduction <add>, %79, %cst_34 [1] : vector<8x32xf32> to vector<8xf32>
    %81 = vector.shape_cast %80 : vector<8xf32> to vector<8x1xf32>
    %82 = vector.broadcast %59 : vector<1x32xf32> to vector<8x32xf32>
    %83 = arith.mulf %69, %82 : vector<8x32xf32>
    %cst_35 = arith.constant dense<0.000000e+00> : vector<8xf32>
    %84 = vector.multi_reduction <add>, %83, %cst_35 [1] : vector<8x32xf32> to vector<8xf32>
    %85 = vector.shape_cast %84 : vector<8xf32> to vector<8x1xf32>
    %c0_i32_36 = arith.constant 0 : i32
    %86 = arith.cmpi eq, %0, %c0_i32_36 : i32
    %87 = arith.extui %86 : i1 to i32
    %88 = arith.sitofp %87 : i32 to f32
    %89 = vector.broadcast %88 : f32 to vector<8x32xf32>
    %90 = arith.mulf %63, %89 : vector<8x32xf32>
    %c1_i32_37 = arith.constant 1 : i32
    %91 = arith.cmpi eq, %0, %c1_i32_37 : i32
    %92 = arith.extui %91 : i1 to i32
    %93 = arith.sitofp %92 : i32 to f32
    %94 = vector.broadcast %93 : f32 to vector<8x32xf32>
    %95 = arith.mulf %65, %94 : vector<8x32xf32>
    %96 = arith.addf %90, %95 : vector<8x32xf32>
    %c2_i32_38 = arith.constant 2 : i32
    %97 = arith.cmpi eq, %0, %c2_i32_38 : i32
    %98 = arith.extui %97 : i1 to i32
    %99 = arith.sitofp %98 : i32 to f32
    %100 = vector.broadcast %99 : f32 to vector<8x32xf32>
    %101 = arith.mulf %67, %100 : vector<8x32xf32>
    %102 = arith.addf %96, %101 : vector<8x32xf32>
    %c3_i32_39 = arith.constant 3 : i32
    %103 = arith.cmpi eq, %0, %c3_i32_39 : i32
    %104 = arith.extui %103 : i1 to i32
    %105 = arith.sitofp %104 : i32 to f32
    %106 = vector.broadcast %105 : f32 to vector<8x32xf32>
    %107 = arith.mulf %69, %106 : vector<8x32xf32>
    %108 = arith.addf %102, %107 : vector<8x32xf32>
    %109 = vector.broadcast %60 : vector<1x32xf32> to vector<8x32xf32>
    %110 = arith.mulf %108, %109 : vector<8x32xf32>
    %cst_40 = arith.constant dense<0.000000e+00> : vector<8xf32>
    %111 = vector.multi_reduction <add>, %110, %cst_40 [1] : vector<8x32xf32> to vector<8xf32>
    %112 = vector.shape_cast %111 : vector<8xf32> to vector<8x1xf32>
    %113 = arith.addf %73, %112 : vector<8x1xf32>
    %cst_41 = arith.constant 0.000000e+00 : f32
    %114 = vector.broadcast %cst_41 : f32 to vector<8x1xf32>
    %115 = arith.cmpf ogt, %113, %114 : vector<8x1xf32>
    %cst_42 = arith.constant 2.000000e-01 : f32
    %116 = vector.broadcast %cst_42 : f32 to vector<8x1xf32>
    %117 = arith.mulf %116, %113 : vector<8x1xf32>
    %118 = arith.select %115, %113, %117 : vector<8x1xi1>, vector<8x1xf32>
    %119 = arith.addf %77, %112 : vector<8x1xf32>
    %cst_43 = arith.constant 0.000000e+00 : f32
    %120 = vector.broadcast %cst_43 : f32 to vector<8x1xf32>
    %121 = arith.cmpf ogt, %119, %120 : vector<8x1xf32>
    %cst_44 = arith.constant 2.000000e-01 : f32
    %122 = vector.broadcast %cst_44 : f32 to vector<8x1xf32>
    %123 = arith.mulf %122, %119 : vector<8x1xf32>
    %124 = arith.select %121, %119, %123 : vector<8x1xi1>, vector<8x1xf32>
    %125 = arith.addf %81, %112 : vector<8x1xf32>
    %cst_45 = arith.constant 0.000000e+00 : f32
    %126 = vector.broadcast %cst_45 : f32 to vector<8x1xf32>
    %127 = arith.cmpf ogt, %125, %126 : vector<8x1xf32>
    %cst_46 = arith.constant 2.000000e-01 : f32
    %128 = vector.broadcast %cst_46 : f32 to vector<8x1xf32>
    %129 = arith.mulf %128, %125 : vector<8x1xf32>
    %130 = arith.select %127, %125, %129 : vector<8x1xi1>, vector<8x1xf32>
    %131 = arith.addf %85, %112 : vector<8x1xf32>
    %cst_47 = arith.constant 0.000000e+00 : f32
    %132 = vector.broadcast %cst_47 : f32 to vector<8x1xf32>
    %133 = arith.cmpf ogt, %131, %132 : vector<8x1xf32>
    %cst_48 = arith.constant 2.000000e-01 : f32
    %134 = vector.broadcast %cst_48 : f32 to vector<8x1xf32>
    %135 = arith.mulf %134, %131 : vector<8x1xf32>
    %136 = arith.select %133, %131, %135 : vector<8x1xi1>, vector<8x1xf32>
    %137 = arith.maximumf %118, %124 : vector<8x1xf32>
    %138 = arith.maximumf %137, %130 : vector<8x1xf32>
    %139 = arith.maximumf %138, %136 : vector<8x1xf32>
    %140 = arith.subf %118, %139 : vector<8x1xf32>
    %141 = math.exp %140 : vector<8x1xf32>
    %142 = arith.subf %124, %139 : vector<8x1xf32>
    %143 = math.exp %142 : vector<8x1xf32>
    %144 = arith.subf %130, %139 : vector<8x1xf32>
    %145 = math.exp %144 : vector<8x1xf32>
    %146 = arith.subf %136, %139 : vector<8x1xf32>
    %147 = math.exp %146 : vector<8x1xf32>
    %148 = arith.addf %141, %143 : vector<8x1xf32>
    %149 = arith.addf %148, %145 : vector<8x1xf32>
    %150 = arith.addf %149, %147 : vector<8x1xf32>
    %151 = tpu.reciprocal %150 {approx = true} : vector<8x1xf32> -> vector<8x1xf32>
    %152 = arith.mulf %141, %151 : vector<8x1xf32>
    %153 = vector.broadcast %152 : vector<8x1xf32> to vector<8x32xf32>
    %154 = arith.mulf %153, %63 : vector<8x32xf32>
    %155 = arith.mulf %143, %151 : vector<8x1xf32>
    %156 = vector.broadcast %155 : vector<8x1xf32> to vector<8x32xf32>
    %157 = arith.mulf %156, %65 : vector<8x32xf32>
    %158 = arith.addf %154, %157 : vector<8x32xf32>
    %159 = arith.mulf %145, %151 : vector<8x1xf32>
    %160 = vector.broadcast %159 : vector<8x1xf32> to vector<8x32xf32>
    %161 = arith.mulf %160, %67 : vector<8x32xf32>
    %162 = arith.addf %158, %161 : vector<8x32xf32>
    %163 = arith.mulf %147, %151 : vector<8x1xf32>
    %164 = vector.broadcast %163 : vector<8x1xf32> to vector<8x32xf32>
    %165 = arith.mulf %164, %69 : vector<8x32xf32>
    %166 = arith.addf %162, %165 : vector<8x32xf32>
    %167 = vector.broadcast %61 : vector<1x32xf32> to vector<8x32xf32>
    %168 = arith.addf %166, %167 : vector<8x32xf32>
    %c0_i32_49 = arith.constant 0 : i32
    %169 = arith.cmpi eq, %0, %c0_i32_49 : i32
    %170 = arith.extui %169 : i1 to i32
    %171 = arith.sitofp %170 : i32 to f32
    %172 = vector.broadcast %171 : f32 to vector<8x32xf32>
    %173 = arith.mulf %168, %172 : vector<8x32xf32>
    %174 = vector.broadcast %61 : vector<1x32xf32> to vector<8x32xf32>
    %175 = arith.addf %63, %174 : vector<8x32xf32>
    %cst_50 = arith.constant 1.000000e+00 : f32
    %176 = arith.subf %cst_50, %171 : f32
    %177 = vector.broadcast %176 : f32 to vector<8x32xf32>
    %178 = arith.mulf %175, %177 : vector<8x32xf32>
    %179 = arith.addf %173, %178 : vector<8x32xf32>
    %cst_51 = arith.constant 0.000000e+00 : f32
    %180 = vector.broadcast %cst_51 : f32 to vector<8x32xf32>
    %181 = arith.maximumf %179, %180 : vector<8x32xf32>
    %c1_i32_52 = arith.constant 1 : i32
    %182 = arith.cmpi eq, %0, %c1_i32_52 : i32
    %183 = arith.extui %182 : i1 to i32
    %184 = arith.sitofp %183 : i32 to f32
    %185 = vector.broadcast %184 : f32 to vector<8x32xf32>
    %186 = arith.mulf %168, %185 : vector<8x32xf32>
    %187 = vector.broadcast %61 : vector<1x32xf32> to vector<8x32xf32>
    %188 = arith.addf %65, %187 : vector<8x32xf32>
    %cst_53 = arith.constant 1.000000e+00 : f32
    %189 = arith.subf %cst_53, %184 : f32
    %190 = vector.broadcast %189 : f32 to vector<8x32xf32>
    %191 = arith.mulf %188, %190 : vector<8x32xf32>
    %192 = arith.addf %186, %191 : vector<8x32xf32>
    %cst_54 = arith.constant 0.000000e+00 : f32
    %193 = vector.broadcast %cst_54 : f32 to vector<8x32xf32>
    %194 = arith.maximumf %192, %193 : vector<8x32xf32>
    %c2_i32_55 = arith.constant 2 : i32
    %195 = arith.cmpi eq, %0, %c2_i32_55 : i32
    %196 = arith.extui %195 : i1 to i32
    %197 = arith.sitofp %196 : i32 to f32
    %198 = vector.broadcast %197 : f32 to vector<8x32xf32>
    %199 = arith.mulf %168, %198 : vector<8x32xf32>
    %200 = vector.broadcast %61 : vector<1x32xf32> to vector<8x32xf32>
    %201 = arith.addf %67, %200 : vector<8x32xf32>
    %cst_56 = arith.constant 1.000000e+00 : f32
    %202 = arith.subf %cst_56, %197 : f32
    %203 = vector.broadcast %202 : f32 to vector<8x32xf32>
    %204 = arith.mulf %201, %203 : vector<8x32xf32>
    %205 = arith.addf %199, %204 : vector<8x32xf32>
    %cst_57 = arith.constant 0.000000e+00 : f32
    %206 = vector.broadcast %cst_57 : f32 to vector<8x32xf32>
    %207 = arith.maximumf %205, %206 : vector<8x32xf32>
    %c3_i32_58 = arith.constant 3 : i32
    %208 = arith.cmpi eq, %0, %c3_i32_58 : i32
    %209 = arith.extui %208 : i1 to i32
    %210 = arith.sitofp %209 : i32 to f32
    %211 = vector.broadcast %210 : f32 to vector<8x32xf32>
    %212 = arith.mulf %168, %211 : vector<8x32xf32>
    %213 = vector.broadcast %61 : vector<1x32xf32> to vector<8x32xf32>
    %214 = arith.addf %69, %213 : vector<8x32xf32>
    %cst_59 = arith.constant 1.000000e+00 : f32
    %215 = arith.subf %cst_59, %210 : f32
    %216 = vector.broadcast %215 : f32 to vector<8x32xf32>
    %217 = arith.mulf %214, %216 : vector<8x32xf32>
    %218 = arith.addf %212, %217 : vector<8x32xf32>
    %cst_60 = arith.constant 0.000000e+00 : f32
    %219 = vector.broadcast %cst_60 : f32 to vector<8x32xf32>
    %220 = arith.maximumf %218, %219 : vector<8x32xf32>
    %cst_61 = arith.constant 0.000000e+00 : f32
    %221 = vector.broadcast %cst_61 : f32 to vector<8x32xf32>
    %222 = arith.maximumf %168, %221 : vector<8x32xf32>
    %c0_62 = arith.constant 0 : index
    %c0_63 = arith.constant 0 : index
    %223 = vector.load %arg9[%c0_62, %c0_63] : memref<32x32xbf16, #tpu.memory_space<vmem>>, vector<32x32xbf16>
    %c0_64 = arith.constant 0 : index
    %c0_65 = arith.constant 0 : index
    %224 = vector.load %arg10[%c0_64, %c0_65] : memref<1x32xf32, #tpu.memory_space<vmem>>, vector<1x32xf32>
    %c0_66 = arith.constant 0 : index
    %c0_67 = arith.constant 0 : index
    %225 = vector.load %arg11[%c0_66, %c0_67] : memref<1x32xf32, #tpu.memory_space<vmem>>, vector<1x32xf32>
    %c0_68 = arith.constant 0 : index
    %c0_69 = arith.constant 0 : index
    %226 = vector.load %arg12[%c0_68, %c0_69] : memref<1x32xf32, #tpu.memory_space<vmem>>, vector<1x32xf32>
    %227 = arith.truncf %181 : vector<8x32xf32> to vector<8x32xbf16>
    %cst_70 = arith.constant dense<0.000000e+00> : vector<8x32xf32>
    %228 = tpu.matmul %227, %223, %cst_70 {dimension_numbers = #tpu.dot_dimension_numbers<[1], [0], [0], [1], [0, 0, 1, 1], [], []>} : vector<8x32xbf16>, vector<32x32xbf16>, vector<8x32xf32> -> vector<8x32xf32>
    %229 = arith.truncf %194 : vector<8x32xf32> to vector<8x32xbf16>
    %cst_71 = arith.constant dense<0.000000e+00> : vector<8x32xf32>
    %230 = tpu.matmul %229, %223, %cst_71 {dimension_numbers = #tpu.dot_dimension_numbers<[1], [0], [0], [1], [0, 0, 1, 1], [], []>} : vector<8x32xbf16>, vector<32x32xbf16>, vector<8x32xf32> -> vector<8x32xf32>
    %231 = arith.truncf %207 : vector<8x32xf32> to vector<8x32xbf16>
    %cst_72 = arith.constant dense<0.000000e+00> : vector<8x32xf32>
    %232 = tpu.matmul %231, %223, %cst_72 {dimension_numbers = #tpu.dot_dimension_numbers<[1], [0], [0], [1], [0, 0, 1, 1], [], []>} : vector<8x32xbf16>, vector<32x32xbf16>, vector<8x32xf32> -> vector<8x32xf32>
    %233 = arith.truncf %220 : vector<8x32xf32> to vector<8x32xbf16>
    %cst_73 = arith.constant dense<0.000000e+00> : vector<8x32xf32>
    %234 = tpu.matmul %233, %223, %cst_73 {dimension_numbers = #tpu.dot_dimension_numbers<[1], [0], [0], [1], [0, 0, 1, 1], [], []>} : vector<8x32xbf16>, vector<32x32xbf16>, vector<8x32xf32> -> vector<8x32xf32>
    %235 = vector.broadcast %224 : vector<1x32xf32> to vector<8x32xf32>
    %236 = arith.mulf %228, %235 : vector<8x32xf32>
    %cst_74 = arith.constant dense<0.000000e+00> : vector<8xf32>
    %237 = vector.multi_reduction <add>, %236, %cst_74 [1] : vector<8x32xf32> to vector<8xf32>
    %238 = vector.shape_cast %237 : vector<8xf32> to vector<8x1xf32>
    %239 = vector.broadcast %224 : vector<1x32xf32> to vector<8x32xf32>
    %240 = arith.mulf %230, %239 : vector<8x32xf32>
    %cst_75 = arith.constant dense<0.000000e+00> : vector<8xf32>
    %241 = vector.multi_reduction <add>, %240, %cst_75 [1] : vector<8x32xf32> to vector<8xf32>
    %242 = vector.shape_cast %241 : vector<8xf32> to vector<8x1xf32>
    %243 = vector.broadcast %224 : vector<1x32xf32> to vector<8x32xf32>
    %244 = arith.mulf %232, %243 : vector<8x32xf32>
    %cst_76 = arith.constant dense<0.000000e+00> : vector<8xf32>
    %245 = vector.multi_reduction <add>, %244, %cst_76 [1] : vector<8x32xf32> to vector<8xf32>
    %246 = vector.shape_cast %245 : vector<8xf32> to vector<8x1xf32>
    %247 = vector.broadcast %224 : vector<1x32xf32> to vector<8x32xf32>
    %248 = arith.mulf %234, %247 : vector<8x32xf32>
    %cst_77 = arith.constant dense<0.000000e+00> : vector<8xf32>
    %249 = vector.multi_reduction <add>, %248, %cst_77 [1] : vector<8x32xf32> to vector<8xf32>
    %250 = vector.shape_cast %249 : vector<8xf32> to vector<8x1xf32>
    %c0_i32_78 = arith.constant 0 : i32
    %251 = arith.cmpi eq, %0, %c0_i32_78 : i32
    %252 = arith.extui %251 : i1 to i32
    %253 = arith.sitofp %252 : i32 to f32
    %254 = vector.broadcast %253 : f32 to vector<8x32xf32>
    %255 = arith.mulf %228, %254 : vector<8x32xf32>
    %c1_i32_79 = arith.constant 1 : i32
    %256 = arith.cmpi eq, %0, %c1_i32_79 : i32
    %257 = arith.extui %256 : i1 to i32
    %258 = arith.sitofp %257 : i32 to f32
    %259 = vector.broadcast %258 : f32 to vector<8x32xf32>
    %260 = arith.mulf %230, %259 : vector<8x32xf32>
    %261 = arith.addf %255, %260 : vector<8x32xf32>
    %c2_i32_80 = arith.constant 2 : i32
    %262 = arith.cmpi eq, %0, %c2_i32_80 : i32
    %263 = arith.extui %262 : i1 to i32
    %264 = arith.sitofp %263 : i32 to f32
    %265 = vector.broadcast %264 : f32 to vector<8x32xf32>
    %266 = arith.mulf %232, %265 : vector<8x32xf32>
    %267 = arith.addf %261, %266 : vector<8x32xf32>
    %c3_i32_81 = arith.constant 3 : i32
    %268 = arith.cmpi eq, %0, %c3_i32_81 : i32
    %269 = arith.extui %268 : i1 to i32
    %270 = arith.sitofp %269 : i32 to f32
    %271 = vector.broadcast %270 : f32 to vector<8x32xf32>
    %272 = arith.mulf %234, %271 : vector<8x32xf32>
    %273 = arith.addf %267, %272 : vector<8x32xf32>
    %274 = vector.broadcast %225 : vector<1x32xf32> to vector<8x32xf32>
    %275 = arith.mulf %273, %274 : vector<8x32xf32>
    %cst_82 = arith.constant dense<0.000000e+00> : vector<8xf32>
    %276 = vector.multi_reduction <add>, %275, %cst_82 [1] : vector<8x32xf32> to vector<8xf32>
    %277 = vector.shape_cast %276 : vector<8xf32> to vector<8x1xf32>
    %278 = arith.addf %238, %277 : vector<8x1xf32>
    %cst_83 = arith.constant 0.000000e+00 : f32
    %279 = vector.broadcast %cst_83 : f32 to vector<8x1xf32>
    %280 = arith.cmpf ogt, %278, %279 : vector<8x1xf32>
    %cst_84 = arith.constant 2.000000e-01 : f32
    %281 = vector.broadcast %cst_84 : f32 to vector<8x1xf32>
    %282 = arith.mulf %281, %278 : vector<8x1xf32>
    %283 = arith.select %280, %278, %282 : vector<8x1xi1>, vector<8x1xf32>
    %284 = arith.addf %242, %277 : vector<8x1xf32>
    %cst_85 = arith.constant 0.000000e+00 : f32
    %285 = vector.broadcast %cst_85 : f32 to vector<8x1xf32>
    %286 = arith.cmpf ogt, %284, %285 : vector<8x1xf32>
    %cst_86 = arith.constant 2.000000e-01 : f32
    %287 = vector.broadcast %cst_86 : f32 to vector<8x1xf32>
    %288 = arith.mulf %287, %284 : vector<8x1xf32>
    %289 = arith.select %286, %284, %288 : vector<8x1xi1>, vector<8x1xf32>
    %290 = arith.addf %246, %277 : vector<8x1xf32>
    %cst_87 = arith.constant 0.000000e+00 : f32
    %291 = vector.broadcast %cst_87 : f32 to vector<8x1xf32>
    %292 = arith.cmpf ogt, %290, %291 : vector<8x1xf32>
    %cst_88 = arith.constant 2.000000e-01 : f32
    %293 = vector.broadcast %cst_88 : f32 to vector<8x1xf32>
    %294 = arith.mulf %293, %290 : vector<8x1xf32>
    %295 = arith.select %292, %290, %294 : vector<8x1xi1>, vector<8x1xf32>
    %296 = arith.addf %250, %277 : vector<8x1xf32>
    %cst_89 = arith.constant 0.000000e+00 : f32
    %297 = vector.broadcast %cst_89 : f32 to vector<8x1xf32>
    %298 = arith.cmpf ogt, %296, %297 : vector<8x1xf32>
    %cst_90 = arith.constant 2.000000e-01 : f32
    %299 = vector.broadcast %cst_90 : f32 to vector<8x1xf32>
    %300 = arith.mulf %299, %296 : vector<8x1xf32>
    %301 = arith.select %298, %296, %300 : vector<8x1xi1>, vector<8x1xf32>
    %302 = arith.maximumf %283, %289 : vector<8x1xf32>
    %303 = arith.maximumf %302, %295 : vector<8x1xf32>
    %304 = arith.maximumf %303, %301 : vector<8x1xf32>
    %305 = arith.subf %283, %304 : vector<8x1xf32>
    %306 = math.exp %305 : vector<8x1xf32>
    %307 = arith.subf %289, %304 : vector<8x1xf32>
    %308 = math.exp %307 : vector<8x1xf32>
    %309 = arith.subf %295, %304 : vector<8x1xf32>
    %310 = math.exp %309 : vector<8x1xf32>
    %311 = arith.subf %301, %304 : vector<8x1xf32>
    %312 = math.exp %311 : vector<8x1xf32>
    %313 = arith.addf %306, %308 : vector<8x1xf32>
    %314 = arith.addf %313, %310 : vector<8x1xf32>
    %315 = arith.addf %314, %312 : vector<8x1xf32>
    %316 = tpu.reciprocal %315 {approx = true} : vector<8x1xf32> -> vector<8x1xf32>
    %317 = arith.mulf %306, %316 : vector<8x1xf32>
    %318 = vector.broadcast %317 : vector<8x1xf32> to vector<8x32xf32>
    %319 = arith.mulf %318, %228 : vector<8x32xf32>
    %320 = arith.mulf %308, %316 : vector<8x1xf32>
    %321 = vector.broadcast %320 : vector<8x1xf32> to vector<8x32xf32>
    %322 = arith.mulf %321, %230 : vector<8x32xf32>
    %323 = arith.addf %319, %322 : vector<8x32xf32>
    %324 = arith.mulf %310, %316 : vector<8x1xf32>
    %325 = vector.broadcast %324 : vector<8x1xf32> to vector<8x32xf32>
    %326 = arith.mulf %325, %232 : vector<8x32xf32>
    %327 = arith.addf %323, %326 : vector<8x32xf32>
    %328 = arith.mulf %312, %316 : vector<8x1xf32>
    %329 = vector.broadcast %328 : vector<8x1xf32> to vector<8x32xf32>
    %330 = arith.mulf %329, %234 : vector<8x32xf32>
    %331 = arith.addf %327, %330 : vector<8x32xf32>
    %332 = vector.broadcast %226 : vector<1x32xf32> to vector<8x32xf32>
    %333 = arith.addf %331, %332 : vector<8x32xf32>
    %cst_91 = arith.constant 0.000000e+00 : f32
    %334 = vector.broadcast %cst_91 : f32 to vector<8x32xf32>
    %335 = arith.maximumf %333, %334 : vector<8x32xf32>
    %336 = arith.truncf %57 : vector<8x32xf32> to vector<8x32xbf16>
    %c0_92 = arith.constant 0 : index
    %c0_93 = arith.constant 0 : index
    %337 = vector.load %arg13[%c0_92, %c0_93] : memref<32x64xbf16, #tpu.memory_space<vmem>>, vector<32x64xbf16>
    %cst_94 = arith.constant dense<0.000000e+00> : vector<8x64xf32>
    %338 = tpu.matmul %336, %337, %cst_94 {dimension_numbers = #tpu.dot_dimension_numbers<[1], [0], [0], [1], [0, 0, 1, 1], [], []>} : vector<8x32xbf16>, vector<32x64xbf16>, vector<8x64xf32> -> vector<8x64xf32>
    %339 = arith.truncf %222 : vector<8x32xf32> to vector<8x32xbf16>
    %c0_95 = arith.constant 0 : index
    %c0_96 = arith.constant 0 : index
    %340 = vector.load %arg14[%c0_95, %c0_96] : memref<32x64xbf16, #tpu.memory_space<vmem>>, vector<32x64xbf16>
    %cst_97 = arith.constant dense<0.000000e+00> : vector<8x64xf32>
    %341 = tpu.matmul %339, %340, %cst_97 {dimension_numbers = #tpu.dot_dimension_numbers<[1], [0], [0], [1], [0, 0, 1, 1], [], []>} : vector<8x32xbf16>, vector<32x64xbf16>, vector<8x64xf32> -> vector<8x64xf32>
    %342 = arith.addf %338, %341 : vector<8x64xf32>
    %343 = arith.truncf %335 : vector<8x32xf32> to vector<8x32xbf16>
    %c0_98 = arith.constant 0 : index
    %c0_99 = arith.constant 0 : index
    %344 = vector.load %arg15[%c0_98, %c0_99] : memref<32x64xbf16, #tpu.memory_space<vmem>>, vector<32x64xbf16>
    %cst_100 = arith.constant dense<0.000000e+00> : vector<8x64xf32>
    %345 = tpu.matmul %343, %344, %cst_100 {dimension_numbers = #tpu.dot_dimension_numbers<[1], [0], [0], [1], [0, 0, 1, 1], [], []>} : vector<8x32xbf16>, vector<32x64xbf16>, vector<8x64xf32> -> vector<8x64xf32>
    %346 = arith.addf %342, %345 : vector<8x64xf32>
    %c0_101 = arith.constant 0 : index
    %c0_102 = arith.constant 0 : index
    %347 = vector.load %arg16[%c0_101, %c0_102] : memref<1x64xf32, #tpu.memory_space<vmem>>, vector<1x64xf32>
    %348 = vector.broadcast %347 : vector<1x64xf32> to vector<8x64xf32>
    %349 = arith.addf %346, %348 : vector<8x64xf32>
    %cst_103 = arith.constant 0.000000e+00 : f32
    %350 = vector.broadcast %cst_103 : f32 to vector<8x64xf32>
    %351 = arith.maximumf %349, %350 : vector<8x64xf32>
    %c0_104 = arith.constant 0 : index
    %c0_105 = arith.constant 0 : index
    %352 = vector.load %arg17[%c0_104, %c0_105] : memref<1x64xf32, #tpu.memory_space<vmem>>, vector<1x64xf32>
    %353 = vector.broadcast %352 : vector<1x64xf32> to vector<8x64xf32>
    %354 = arith.mulf %351, %353 : vector<8x64xf32>
    %cst_106 = arith.constant dense<0.000000e+00> : vector<8xf32>
    %355 = vector.multi_reduction <add>, %354, %cst_106 [1] : vector<8x64xf32> to vector<8xf32>
    %356 = vector.shape_cast %355 : vector<8xf32> to vector<8x1xf32>
    %c0_107 = arith.constant 0 : index
    %c0_108 = arith.constant 0 : index
    %357 = vector.load %arg18[%c0_107, %c0_108] : memref<1x1xf32, #tpu.memory_space<vmem>>, vector<1x1xf32>
    %358 = vector.broadcast %357 : vector<1x1xf32> to vector<8x1xf32>
    %359 = arith.addf %356, %358 : vector<8x1xf32>
    %c0_109 = arith.constant 0 : index
    %c0_110 = arith.constant 0 : index
    %360 = vector.load %arg19[%c0_109, %c0_110] : memref<8x1xf32, #tpu.memory_space<vmem>>, vector<8x1xf32>
    tpu.vector_store %arg19[%c0_109, %c0_110], %359 {strides = array<i32>} : memref<8x1xf32, #tpu.memory_space<vmem>>, vector<8x1xf32>,
    return
  }
  func.func @transform_0(%arg0: i32, %arg1: memref<1xi32, #tpu.memory_space<smem>>) -> (i32, i32, i32) {
    %c0_i32 = arith.constant 0 : i32
    %c0_i32_0 = arith.constant 0 : i32
    %c0_i32_1 = arith.constant 0 : i32
    return %c0_i32, %arg0, %c0_i32_0 : i32, i32, i32
  }
  func.func @transform_1(%arg0: i32, %arg1: memref<1xi32, #tpu.memory_space<smem>>) -> (i32, i32) {
    %c0_i32 = arith.constant 0 : i32
    %c0_i32_0 = arith.constant 0 : i32
    %c0_i32_1 = arith.constant 0 : i32
    return %c0_i32, %c0_i32_0 : i32, i32
  }
  func.func @transform_2(%arg0: i32, %arg1: memref<1xi32, #tpu.memory_space<smem>>) -> (i32, i32) {
    %c0_i32 = arith.constant 0 : i32
    %c0_i32_0 = arith.constant 0 : i32
    %c0_i32_1 = arith.constant 0 : i32
    return %c0_i32, %c0_i32_0 : i32, i32
  }
  func.func @transform_3(%arg0: i32, %arg1: memref<1xi32, #tpu.memory_space<smem>>) -> (i32, i32) {
    %c0_i32 = arith.constant 0 : i32
    %c0_i32_0 = arith.constant 0 : i32
    %c0_i32_1 = arith.constant 0 : i32
    return %c0_i32, %c0_i32_0 : i32, i32
  }
  func.func @transform_4(%arg0: i32, %arg1: memref<1xi32, #tpu.memory_space<smem>>) -> (i32, i32) {
    %c0_i32 = arith.constant 0 : i32
    %c0_i32_0 = arith.constant 0 : i32
    %c0_i32_1 = arith.constant 0 : i32
    return %c0_i32, %c0_i32_0 : i32, i32
  }
  func.func @transform_5(%arg0: i32, %arg1: memref<1xi32, #tpu.memory_space<smem>>) -> (i32, i32) {
    %c0_i32 = arith.constant 0 : i32
    %c0_i32_0 = arith.constant 0 : i32
    %c0_i32_1 = arith.constant 0 : i32
    return %c0_i32, %c0_i32_0 : i32, i32
  }
  func.func @transform_6(%arg0: i32, %arg1: memref<1xi32, #tpu.memory_space<smem>>) -> (i32, i32) {
    %c0_i32 = arith.constant 0 : i32
    %c0_i32_0 = arith.constant 0 : i32
    %c0_i32_1 = arith.constant 0 : i32
    return %c0_i32, %c0_i32_0 : i32, i32
  }
  func.func @transform_7(%arg0: i32, %arg1: memref<1xi32, #tpu.memory_space<smem>>) -> (i32, i32) {
    %c0_i32 = arith.constant 0 : i32
    %c0_i32_0 = arith.constant 0 : i32
    %c0_i32_1 = arith.constant 0 : i32
    return %c0_i32, %c0_i32_0 : i32, i32
  }
  func.func @transform_8(%arg0: i32, %arg1: memref<1xi32, #tpu.memory_space<smem>>) -> (i32, i32) {
    %c0_i32 = arith.constant 0 : i32
    %c0_i32_0 = arith.constant 0 : i32
    %c0_i32_1 = arith.constant 0 : i32
    return %c0_i32, %c0_i32_0 : i32, i32
  }
  func.func @transform_9(%arg0: i32, %arg1: memref<1xi32, #tpu.memory_space<smem>>) -> (i32, i32) {
    %c0_i32 = arith.constant 0 : i32
    %c0_i32_0 = arith.constant 0 : i32
    %c0_i32_1 = arith.constant 0 : i32
    return %c0_i32, %c0_i32_0 : i32, i32
  }
  func.func @transform_10(%arg0: i32, %arg1: memref<1xi32, #tpu.memory_space<smem>>) -> (i32, i32) {
    %c0_i32 = arith.constant 0 : i32
    %c0_i32_0 = arith.constant 0 : i32
    %c0_i32_1 = arith.constant 0 : i32
    return %c0_i32, %c0_i32_0 : i32, i32
  }
  func.func @transform_11(%arg0: i32, %arg1: memref<1xi32, #tpu.memory_space<smem>>) -> (i32, i32) {
    %c0_i32 = arith.constant 0 : i32
    %c0_i32_0 = arith.constant 0 : i32
    %c0_i32_1 = arith.constant 0 : i32
    return %c0_i32, %c0_i32_0 : i32, i32
  }
  func.func @transform_12(%arg0: i32, %arg1: memref<1xi32, #tpu.memory_space<smem>>) -> (i32, i32) {
    %c0_i32 = arith.constant 0 : i32
    %c0_i32_0 = arith.constant 0 : i32
    %c0_i32_1 = arith.constant 0 : i32
    return %c0_i32, %c0_i32_0 : i32, i32
  }
  func.func @transform_13(%arg0: i32, %arg1: memref<1xi32, #tpu.memory_space<smem>>) -> (i32, i32) {
    %c0_i32 = arith.constant 0 : i32
    %c0_i32_0 = arith.constant 0 : i32
    %c0_i32_1 = arith.constant 0 : i32
    return %c0_i32, %c0_i32_0 : i32, i32
  }
  func.func @transform_14(%arg0: i32, %arg1: memref<1xi32, #tpu.memory_space<smem>>) -> (i32, i32) {
    %c0_i32 = arith.constant 0 : i32
    %c0_i32_0 = arith.constant 0 : i32
    %c0_i32_1 = arith.constant 0 : i32
    return %c0_i32, %c0_i32_0 : i32, i32
  }
  func.func @transform_15(%arg0: i32, %arg1: memref<1xi32, #tpu.memory_space<smem>>) -> (i32, i32) {
    %c0_i32 = arith.constant 0 : i32
    %c0_i32_0 = arith.constant 0 : i32
    %c0_i32_1 = arith.constant 0 : i32
    return %c0_i32, %c0_i32_0 : i32, i32
  }
  func.func @transform_16(%arg0: i32, %arg1: memref<1xi32, #tpu.memory_space<smem>>) -> (i32, i32) {
    %c0_i32 = arith.constant 0 : i32
    %c0_i32_0 = arith.constant 0 : i32
    %c0_i32_1 = arith.constant 0 : i32
    return %c0_i32, %c0_i32_0 : i32, i32
  }
  func.func @transform_17(%arg0: i32, %arg1: memref<1xi32, #tpu.memory_space<smem>>) -> (i32, i32) {
    %c0_i32 = arith.constant 0 : i32
    %c0_i32_0 = arith.constant 0 : i32
    return %arg0, %c0_i32 : i32, i32
  }
}

</mosaic_0001>

<bundles_post_ra>
// kernel: tpu_custom_call.1
= control target key start
LH: loop header
LB: loop body
LE: loop exit
PB: predicated region body
PF: predicated region fallthrough
CT: control target
= control target key end

     0   :  { %s1774_s0 = inlined_call_operand.<no memory space> [shape: s32[1], index: 0, kind: input, shape index: {}]   ;;  %s1775_s1 = inlined_call_operand.vmem [shape: f32[4,16,12], index: 1, kind: input, shape index: {}]   ;;  %s1776_s2 = inlined_call_operand.vmem [shape: bf16[12,32], index: 2, kind: input, shape index: {}]   ;;  %s1777_s3 = inlined_call_operand.vmem [shape: f32[1,32], index: 3, kind: input, shape index: {}]   ;;  %s1778_s4 = inlined_call_operand.vmem [shape: bf16[32,32], index: 4, kind: input, shape index: {}]   ;;  %s1779_s5 = inlined_call_operand.vmem [shape: f32[1,32], index: 5, kind: input, shape index: {}]   ;;  %s1780_s6 = inlined_call_operand.vmem [shape: f32[1,32], index: 6, kind: input, shape index: {}]   ;;  %s1781_s7 = inlined_call_operand.vmem [shape: f32[1,32], index: 7, kind: input, shape index: {}]   ;;  %s1782_s8 = inlined_call_operand.vmem [shape: bf16[32,32], index: 8, kind: input, shape index: {}]   ;;  %s1783_s9 = inlined_call_operand.vmem [shape: f32[1,32], index: 9, kind: input, shape index: {}]   ;;  %s1784_s10 = inlined_call_operand.vmem [shape: f32[1,32], index: 10, kind: input, shape index: {}]   ;;  %s1785_s11 = inlined_call_operand.vmem [shape: f32[1,32], index: 11, kind: input, shape index: {}]   ;;  %s1786_s12 = inlined_call_operand.vmem [shape: bf16[32,64], index: 12, kind: input, shape index: {}]   ;;  %s1787_s13 = inlined_call_operand.vmem [shape: bf16[32,64], index: 13, kind: input, shape index: {}]   ;;  %s1788_s14 = inlined_call_operand.vmem [shape: bf16[32,64], index: 14, kind: input, shape index: {}]   ;;  %s1789_s15 = inlined_call_operand.vmem [shape: f32[1,64], index: 15, kind: input, shape index: {}]   ;;  %s1790_s16 = inlined_call_operand.vmem [shape: f32[1,64], index: 16, kind: input, shape index: {}]   ;;  %s1791_s17 = inlined_call_operand.<no memory space> [shape: f32[1,1], index: 17, kind: input, shape index: {}]   ;;  %s1792_s18 = inlined_call_operand.vmem [shape: f32[16,1], index: 18, kind: output, shape index: {}]  }
   0x1   :  { %1798 = sst [smem:[#allocation6_spill]] %s1774_s0  ;;  %v24_v0 = vstv %s1791_s17 }
   0x2   :  { %1799 = sst [smem:[#allocation7_spill]] %s1775_s1  ;;  %25 = vst [vmem:[#allocation4] sm:$0x1] %v24_v0 }
   0x3   :  { %1800 = sst [smem:[#allocation8_spill]] %s1776_s2 }
   0x4   :  { %1801 = sst [smem:[#allocation9_spill]] %s1777_s3 }
   0x5   :  { %1802 = sst [smem:[#allocation10_spill]] %s1778_s4 }
   0x6   :  { %1803 = sst [smem:[#allocation11_spill]] %s1779_s5 }
   0x7   :  { %s1804_s29 = sld [smem:[#allocation6_spill]] }
   0xd   :  { %23 = sst [smem:[#allocation3]] %s1804_s29 }
   0xe   :  { %s1533_s19 = smov 0   ;;  %s1535_s1 = smov 0  }
   0xf   :  { %s1537_s20 = smov 0  }
  0x10 LB: > { %s1550_s21 = sadd.s32 1, %s1430_s20   ;;  %s38_s2 = sadd.s32 1, %s1426_s1  ;;  %s1430_s20 = sphi %s1537_s20, %s1818_s20   ;;  %s1426_s1 = sphi %s1535_s1, %s1817_s1   ;;  %s1422_s19 = sphi %s1533_s19, %s1816_s19  }
  0x11   : > { %s35_s22 = ssub.s32 %s1430_s20, %s1550_s21  ;;  %p45_p1 = scmp.ne.s32.totalorder %s1426_s1, %s1422_s19 }
  0x12   : > { %p36_p0 = scmp.eq.s32.totalorder %s35_s22, 0  ;;  %p46_p2 = scmp.eq.s32.totalorder %s1430_s20, 0 }
  0x13   : > { %p1273_p4 = scmp.ge.s32.totalorder %s1430_s20, 2 }
  0x14   : > { %s1559_s23 = scalar_select %p36_p0, %s1426_s1, %s38_s2  }
  0x15   : > { %p47_p3 = por %p46_p2, %p45_p1  ;;  %481 = sbr.rel (%p1273_p4) target bundleno = 40 (0x28), region = 80 }
  0x1a   : > { %484 = sbr.rel (!%p47_p3) target bundleno = 40 (0x28), region = 84  ;;  %s486_s24 = sand.u32 (%p47_p3), 1, %s1426_s1  }
  0x1b   : > { %s1275_s25 = sshll.u32 (%p47_p3), %s1430_s20, 3  ;;  %s1274_s26 = sshll.u32 (%p47_p3), %s486_s24, 5 }
  0x1c   : > { %s1805_s29 = sld [smem:[#allocation7_spill]] (%p47_p3)  ;;  %s488_s0 = scalar_lea.vmem (%p47_p3), [#allocation5], %s1274_s26 }
  0x22   : > { %s490_s30 = scalar_lea.vmem %s1805_s29, %s1275_s25 }
  0x23   : > { %v525_v1 = vld [vmem:[%s490_s30] sm:$0xff]  ;;  %v527_v2 = vld [vmem:[%s490_s30 + $0x10] sm:$0xff] }
  0x24   : > { %v529_v3 = vld [vmem:[%s490_s30 + $0x20] sm:$0xff]  ;;  %526 = vst [vmem:[%s488_s0] sm:$0xff] %v525_v1  ;;  %v531_v4 = vld [vmem:[%s490_s30 + $0x30] sm:$0xff] }
  0x25   : > { %528 = vst [vmem:[%s488_s0 + $0x8] sm:$0xff] %v527_v2 }
  0x26   : > { %530 = vst [vmem:[%s488_s0 + $0x10] sm:$0xff] %v529_v3 }
  0x27   : > { %532 = vst [vmem:[%s488_s0 + $0x18] sm:$0xff] %v531_v4 }
  0x28 PF: > { %p1276_p5 = scmp.ge.s32.totalorder %s1430_s20, 1  ;;  %p537_p6 = scmp.lt.s32.totalorder %s1430_s20, 3 }
  0x2a   : > { %p538_p7 = pnand %p1276_p5, %p537_p6 }
  0x2b   : > { %s1806_s24 = sld [smem:[#allocation8_spill]] (!%p538_p7)  ;;  %s544_s27 = sand.u32 (!%p538_p7), 1, %s1422_s19  }
  0x2c   : > { %541 = sbr.rel (%p538_p7) target bundleno = 1084 (0x43c), region = 122  ;;  %s1277_s28 = sshll.u32 (!%p538_p7), %s544_s27, 5 }
  0x2d   : > { %s1807_s4 = sld [smem:[#allocation10_spill]] (!%p538_p7)  ;;  %s546_s0 = scalar_lea.vmem (!%p538_p7), [#allocation5], %s1277_s28 }
  0x2e   : > { %s599_s2 = sld [smem:[#allocation3]] (!%p538_p7) }
  0x2f   : > { %s1808_s3 = sld [smem:[#allocation9_spill]] (!%p538_p7) }
  0x30   : > { %s1809_s5 = sld [smem:[#allocation11_spill]] (!%p538_p7) }
  0x31   : > { %v1281_v5 = vld [vmem:[%s1806_s24] sm:$0xf]  ;;  %v1343_v6 = vld [vmem:[%s1806_s24] sm:$0x30]  ;;  %vm617_vm0 = vcmask 1045504   ;;  %v1286_v10 = vld [vmem:[%s546_s0 + $0x10] sm:$0xff] }
  0x32   : > { %v1282_v7 = vor.u32 %v1343_v6, %v1281_v5  ;;  %v1288_v11 = vld [vmem:[%s546_s0 + $0x18] sm:$0xff]  ;;  %v603_v12 = vld [vmem:[%s546_s0] sm:$0xff]  ;;  %vm613_vm1 = vcmask 97280   ;;  %v657_v13 = vpack.c.bf16 %v1286_v10, %v1286_v10  ;;  %v1284_v16 = vld [vmem:[%s546_s0 + $0x8] sm:$0xff]  ;;  %vm738_vm2 = vcmask 261120  }
  0x33   : > { %v1345_v8 = vld [vmem:[%s1807_s4 + $0x8] sm:$0xff]  ;;  %v677_v14 = vpack.c.bf16 %v1288_v11, %v1288_v11  ;;  %v604_v15 = vpack.c.bf16 %v603_v12, %v603_v12  ;;  %v637_v17 = vpack.c.bf16 %v1284_v16, %v1284_v16  ;;  %v1344_v18 = vld [vmem:[%s1807_s4] sm:$0xff]  ;;  %vm1200_vm11 = vcmask 523264  }
  0x34   : > { %v619_v9 = vsel %vm617_vm0, %v1282_v7, 0  ;;  %p695_p8 = scmp.eq.s32.totalorder %s599_s2, 0  ;;  %p700_p9 = scmp.eq.s32.totalorder %s599_s2, 1  ;;  %v1381_v6 = vld [vmem:[%s1780_s6] ss:$0 sm:$0xff]  ;;  %vm1209_vm12 = vcmask 7168  }
  0x35   : > { %668 = vmatpush.bf16.msra.mxu2 %v619_v9  ;;  %688 = vmatpush.bf16.msra.mxu3 %v619_v9  ;;  %p706_p10 = scmp.eq.s32.totalorder %s599_s2, 2  ;;  %p712_p11 = scmp.eq.s32.totalorder %s599_s2, 3  ;;  %v1378_v19 = vld [vmem:[%s1808_s3] ss:$0 sm:$0xff] }
  0x36   : > { %628 = vmatpush.bf16.msra.mxu0 %v619_v9  ;;  %648 = vmatpush.bf16.msra.mxu1 %v619_v9  ;;  %s1582_s25 = scalar_select %p695_p8, 1, 0  ;;  %v1380_v51 = vld [vmem:[%s1809_s5] ss:$0 sm:$0xff] }
  0x37   : > { %s1584_s26 = scalar_select %p700_p9, 1, 0 }
  0x38   : > { %1287 = vmatmul.msk.bf16.vlgmr.msra.gmra.mxu2 %vm613_vm1, %v657_v13  ;;  %1289 = vmatmul.msk.bf16.vlgmr.msra.gmra.mxu3 %vm613_vm1, %v677_v14  ;;  %s1797_s29 = scvt.s32.f32 %s1582_s25  ;;  %s1810_s27 = scvt.s32.f32 %s1582_s25 }
  0x39   : > { %782 = vmatpush.bf16.msrb.mxu2 %v1345_v8  ;;  %799 = vmatpush.bf16.msrb.mxu3 %v1345_v8  ;;  %s1796_s30 = scvt.s32.f32 %s1584_s26  ;;  %s1811_s17 = scvt.s32.f32 %s1584_s26 }
  0x3a   : > { %1283 = vmatmul.msk.bf16.vlgmr.msra.gmra.mxu0 %vm613_vm1, %v604_v15  ;;  %1285 = vmatmul.msk.bf16.vlgmr.msra.gmra.mxu1 %vm613_vm1, %v637_v17  ;;  %s1591_s0 = scalar_select %p706_p10, 1, 0  ;;  %v1597_v24 = vstv %s1797_s29 }
  0x3b   : > { %748 = vmatpush.bf16.msrb.mxu0 %v1345_v8  ;;  %765 = vmatpush.bf16.msrb.mxu1 %v1345_v8  ;;  %s1593_s19 = scalar_select %p712_p11, 1, 0  ;;  %v1601_v25 = vstv %s1796_s30 }
  0x3c   : > { %s1795_s22 = scvt.s32.f32 %s1591_s0  ;;  %s891_s28 = ssub.f32 1.0, %s1810_s27 }
  0x3d   : > { %783 = vmatpush.bf16.msrb.mxu2 %v1344_v18  ;;  %800 = vmatpush.bf16.msrb.mxu3 %v1344_v18  ;;  %s1794_s2 = scvt.s32.f32 %s1593_s19  ;;  %s1812_s29 = scvt.s32.f32 %s1591_s0 }
  0x3e   : > { %v1609_v37 = vstv %s1795_s22  ;;  %s1813_s4 = scvt.s32.f32 %s1593_s19 }
  0x3f   : > { %749 = vmatpush.bf16.msrb.mxu0 %v1344_v18  ;;  %766 = vmatpush.bf16.msrb.mxu1 %v1344_v18  ;;  %v1613_v38 = vstv %s1794_s2  ;;  %s898_s2 = ssub.f32 1.0, %s1811_s17 }
  0x40   : > { %s905_s22 = ssub.f32 1.0, %s1812_s29 }
  0x41   : > { %s912_s5 = ssub.f32 1.0, %s1813_s4  ;;  %s1814_s4 = sadd.s32 4294967295, %s1430_s20  }
  0x42   : > { %p594_p12 = scmp.lt.s32.totalorder %s1814_s4, 1 }
  0xb7   : > { %v630_v20 = vpop.f32.mrf.mxu0  ;;  %v650_v21 = vpop.f32.mrf.mxu1 }
  0xb8   : > { %v631_v22 = vadd.f32 %v1378_v19, %v630_v20  ;;  %v651_v23 = vadd.f32 %v1378_v19, %v650_v21 }
  0xba   : > { %v634_v26 = vmax.f32 %v631_v22, 0.0  ;;  %v654_v27 = vmax.f32 %v651_v23, 0.0 }
  0xbb   : > { %v670_v32 = vpop.f32.mrf.mxu2  ;;  %v690_v33 = vpop.f32.mrf.mxu3 }
  0xbc   : > { %v699_v28 = vmul.f32 %v1597_v24, %v634_v26  ;;  %v725_v29 = vpack.c.bf16 %v634_v26, %v634_v26  ;;  %v704_v30 = vmul.f32 %v1601_v25, %v654_v27  ;;  %v755_v31 = vpack.c.bf16 %v654_v27, %v654_v27 }
  0xbd   : > { %v671_v34 = vadd.f32 %v1378_v19, %v670_v32  ;;  %v691_v35 = vadd.f32 %v1378_v19, %v690_v33 }
  0xbe   : > { %v705_v36 = vadd.f32 %v704_v30, %v699_v28  ;;  %1298 = vmatmul.msk.bf16.vlgmr.msrb.gmra.mxu0 %vm738_vm2, %v725_v29  ;;  %1299 = vmatmul.msk.bf16.vlgmr.msrb.gmra.mxu1 %vm738_vm2, %v755_v31 }
  0xbf   : > { %v674_v39 = vmax.f32 %v671_v34, 0.0  ;;  %v694_v40 = vmax.f32 %v691_v35, 0.0  ;;  %v632_v41 = vpop.f32.mrf.mxu0  ;;  %v652_v42 = vpop.f32.mrf.mxu1 }
  0xc1   : > { %v710_v43 = vmul.f32 %v1609_v37, %v674_v39  ;;  %v772_v44 = vpack.c.bf16 %v674_v39, %v674_v39  ;;  %v716_v45 = vmul.f32 %v1613_v38, %v694_v40  ;;  %v789_v46 = vpack.c.bf16 %v694_v40, %v694_v40 }
  0xc3   : > { %v711_v47 = vadd.f32 %v710_v43, %v705_v36  ;;  %1300 = vmatmul.msk.bf16.vlgmr.msrb.gmra.mxu2 %vm738_vm2, %v772_v44  ;;  %1301 = vmatmul.msk.bf16.vlgmr.msrb.gmra.mxu3 %vm738_vm2, %v789_v46  ;;  %v672_v48 = vpop.f32.mrf.mxu2  ;;  %v692_v49 = vpop.f32.mrf.mxu3 }
  0xc5   : > { %v1621_v50 = vadd.f32 %v716_v45, %v711_v47  ;;  %v1347_v45 = vld [vmem:[%s1782_s8 + $0x8] sm:$0xff]  ;;  %v1346_v47 = vld [vmem:[%s1782_s8] sm:$0xff] }
  0xc6   : > { %981 = vmatpush.bf16.msra.mxu2 %v1347_v45  ;;  %998 = vmatpush.bf16.msra.mxu3 %v1347_v45 }
  0xc7   : > { %947 = vmatpush.bf16.msra.mxu0 %v1347_v45  ;;  %964 = vmatpush.bf16.msra.mxu1 %v1347_v45  ;;  %v1382_v45 = vld [vmem:[%s1783_s9] ss:$0 sm:$0xff] }
  0xca   : > { %982 = vmatpush.bf16.msra.mxu2 %v1346_v47  ;;  %999 = vmatpush.bf16.msra.mxu3 %v1346_v47 }
  0xcb   : > { %948 = vmatpush.bf16.msra.mxu0 %v1346_v47  ;;  %965 = vmatpush.bf16.msra.mxu1 %v1346_v47 }
 0x13b   : > { %v1626_v52 = vpop.f32.mrf.mxu0  ;;  %v1628_v53 = vpop.f32.mrf.mxu1 }
 0x13c   : > { %v809_v54 = vmul.f32 %v1380_v51, %v1626_v52  ;;  %v825_v56 = vmul.f32 %v1626_v52, %v1597_v24  ;;  %v826_v57 = vmul.f32 %v1628_v53, %v1601_v25  ;;  %v813_v58 = vmul.f32 %v1380_v51, %v1628_v53 }
 0x13e   : > { %v810_v55 = vsel %vm738_vm2, %v809_v54, 0.0  ;;  %v814_v61 = vsel %vm738_vm2, %v813_v58, 0.0  ;;  %v827_v62 = vadd.f32 %v826_v57, %v825_v56  ;;  %v1351_v56 = vld [vmem:[%s1787_s13 + $0x8] sm:$0xff] }
 0x13f   : > { %811 = vadd.xlane.f32.xlu0 %v810_v55  ;;  %v1349_v57 = vld [vmem:[%s1786_s12 + $0x8] sm:$0xff]  ;;  %1120 = vmatpush.bf16.msrb.mxu0 %v1351_v56 }
 0x140   : > { %1148 = vmatpush.bf16.msrb.mxu1 %v1349_v57 }
 0x143   : > { %v753_v59 = vpop.f32.mrf.mxu0  ;;  %v770_v60 = vpop.f32.mrf.mxu1 }
 0x144   : > { %v1350_v60 = vld [vmem:[%s1787_s13] sm:$0xff] }
 0x145   : > { %1121 = vmatpush.bf16.msrb.mxu0 %v1350_v60 }
 0x146   : > { %v1638_v63 = vpop.f32.mrf.mxu2  ;;  %v1640_v0 = vpop.f32.mrf.mxu3 }
 0x147   : > { %v828_v1 = vmul.f32 %v1638_v63, %v1609_v37  ;;  %v821_v2 = vmul.f32 %v1380_v51, %v1640_v0  ;;  %815 = vadd.xlane.f32.xlu0 %v814_v61  ;;  %v830_v3 = vmul.f32 %v1640_v0, %v1613_v38  ;;  %v817_v12 = vmul.f32 %v1380_v51, %v1638_v63  ;;  %v1348_v61 = vld [vmem:[%s1786_s12] sm:$0xff] }
 0x148   : > { %1149 = vmatpush.bf16.msrb.mxu1 %v1348_v61 }
 0x149   : > { %v822_v4 = vsel %vm738_vm2, %v821_v2, 0.0  ;;  %v829_v5 = vadd.f32 %v828_v1, %v827_v62  ;;  %v818_v13 = vsel %vm738_vm2, %v817_v12, 0.0 }
 0x14a   : > { %823 = vadd.xlane.f32.xlu2 %v822_v4 }
 0x14b   : > { %v831_v7 = vadd.f32 %v830_v3, %v829_v5 }
 0x14d   : > { %v835_v8 = vmul.f32 %v1381_v6, %v831_v7  ;;  %v1379_v7 = vld [vmem:[%s1781_s7] ss:$0 sm:$0xff] }
 0x14e   : > { %v787_v9 = vpop.f32.mrf.mxu2  ;;  %v804_v10 = vpop.f32.mrf.mxu3 }
 0x14f   : > { %v836_v11 = vsel %vm738_vm2, %v835_v8, 0.0  ;;  %v892_v10 = vstv %s891_s28 }
 0x150   : > { %837 = vadd.xlane.f32.xlu1 %v836_v11 }
 0x158   : > { %819 = vadd.xlane.f32.xlu1 %v818_v13  ;;  %v890_v13 = vadd.f32 %v1379_v7, %v1626_v52 }
 0x1b2   : > { %v812_v14 = vpop.xlane.xlu0 %811 }
 0x1ba   : > { %v816_v15 = vpop.xlane.xlu0 %815 }
 0x1bd   : > { %v824_v21 = vpop.xlane.xlu2 %823 }
 0x1c3   : > { %v838_v16 = vpop.xlane.xlu1 %837 }
 0x1c4   : > { %v839_v17 = vadd.f32 %v838_v16, %v812_v14  ;;  %v843_v18 = vadd.f32 %v838_v16, %v816_v15  ;;  %v851_v22 = vadd.f32 %v838_v16, %v824_v21  ;;  %v897_v14 = vadd.f32 %v1379_v7, %v1628_v53 }
 0x1c5   : > { %v904_v15 = vadd.f32 %v1379_v7, %v1638_v63 }
 0x1c6   : > { %v841_v19 = vmul.f32 0.2, %v839_v17  ;;  %v845_v20 = vmul.f32 0.2, %v843_v18  ;;  %vm840_vm3 = vcmp.gt.f32.partialorder %v839_v17, 0.0  ;;  %vm844_vm4 = vcmp.gt.f32.partialorder %v843_v18, 0.0 }
 0x1c7   : > { %v853_v29 = vmul.f32 0.2, %v851_v22  ;;  %vm852_vm6 = vcmp.gt.f32.partialorder %v851_v22, 0.0 }
 0x1c8   : > { %v842_v26 = vsel %vm840_vm3, %v839_v17, %v841_v19  ;;  %v846_v27 = vsel %vm844_vm4, %v843_v18, %v845_v20  ;;  %v899_v17 = vstv %s898_s2  ;;  %v906_v18 = vstv %s905_s22 }
 0x1c9   : > { %v855_v31 = vmax.f32 %v842_v26, %v846_v27  ;;  %v854_v34 = vsel %vm852_vm6, %v851_v22, %v853_v29  ;;  %v913_v19 = vstv %s912_s5  ;;  %v893_v22 = vmul.f32 %v892_v10, %v890_v13  ;;  %s1815_s5 = smov %s1814_s4 }
 0x1ca   : > { %s1820_s5 = smov (!%p594_p12, %s1815_s5), 1 }
 0x1cb   : > { %v820_v23 = vpop.xlane.xlu1 %819  ;;  %s1278_s25 = sshll.u32 %s1820_s5, 3 }
 0x1cc   : > { %v847_v28 = vadd.f32 %v838_v16, %v820_v23  ;;  %v911_v16 = vadd.f32 %v1379_v7, %v1640_v0  ;;  %v900_v23 = vmul.f32 %v899_v17, %v897_v14  ;;  %s597_s19 = scalar_lea.vmem %s1792_s18, %s1278_s25 }
 0x1ce   : > { %vm848_vm5 = vcmp.gt.f32.partialorder %v847_v28, 0.0  ;;  %v849_v30 = vmul.f32 0.2, %v847_v28 }
 0x1d0   : > { %v850_v32 = vsel %vm848_vm5, %v847_v28, %v849_v30 }
 0x1d1   : > { %v856_v33 = vmax.f32 %v855_v31, %v850_v32 }
 0x1d3   : > { %v857_v35 = vmax.f32 %v856_v33, %v854_v34 }
 0x1d5   : > { %v858_v36 = vsub.f32 %v842_v26, %v857_v35  ;;  %v861_v39 = vsub.f32 %v846_v27, %v857_v35  ;;  %v864_v40 = vsub.f32 %v850_v32, %v857_v35  ;;  %v867_v41 = vsub.f32 %v854_v34, %v857_v35 }
 0x1d6   : > { %v907_v26 = vmul.f32 %v906_v18, %v904_v15  ;;  %v914_v27 = vmul.f32 %v913_v19, %v911_v16 }
 0x1d7   : > { %v859_v42 = vmul.f32 1.442695, %v858_v36  ;;  %v862_v43 = vmul.f32 1.442695, %v861_v39  ;;  %v865_v44 = vmul.f32 1.442695, %v864_v40 }
 0x1d8   : > { %v868_v46 = vmul.f32 1.442695, %v867_v41 }
 0x1d9   : > { %1388 = vpow2.f32 %v859_v42 }
 0x1da   : > { %1390 = vpow2.f32 %v862_v43  ;;  %v1089_v43 = vpack.c.bf16 %v1621_v50, %v1621_v50 }
 0x1db   : > { %1392 = vpow2.f32 %v865_v44 }
 0x1dc   : > { %1394 = vpow2.f32 %v868_v46 }
 0x1df   : > { %v1389_v48 = vpop.eup %1388 }
 0x1e0   : > { %v1391_v49 = vpop.eup %1390 }
 0x1e1   : > { %v870_v51 = vadd.f32 %v1391_v49, %v1389_v48  ;;  %v1393_v54 = vpop.eup %1392 }
 0x1e2   : > { %v1395_v58 = vpop.eup %1394 }
 0x1e3   : > { %v871_v55 = vadd.f32 %v1393_v54, %v870_v51 }
 0x1e5   : > { %v872_v59 = vadd.f32 %v1395_v58, %v871_v55 }
 0x1e7   : > { %1396 = vrcp.f32 %v872_v59 }
 0x1ed   : > { %v1397_v62 = vpop.eup %1396 }
 0x1ee   : > { %v874_v1 = vmul.f32 %v1397_v62, %v1389_v48  ;;  %v876_v2 = vmul.f32 %v1397_v62, %v1391_v49  ;;  %v879_v3 = vmul.f32 %v1397_v62, %v1393_v54  ;;  %v882_v6 = vmul.f32 %v1397_v62, %v1395_v58 }
 0x1f0   : > { %v875_v4 = vmul.f32 %v874_v1, %v1626_v52  ;;  %v877_v5 = vmul.f32 %v876_v2, %v1628_v53  ;;  %v880_v9 = vmul.f32 %v879_v3, %v1638_v63  ;;  %v883_v12 = vmul.f32 %v882_v6, %v1640_v0  ;;  %v1383_v2 = vld [vmem:[%s1784_s10] ss:$0 sm:$0xff] }
 0x1f2   : > { %v878_v8 = vadd.f32 %v877_v5, %v875_v4 }
 0x1f4   : > { %v881_v11 = vadd.f32 %v880_v9, %v878_v8 }
 0x1f6   : > { %v884_v20 = vadd.f32 %v883_v12, %v881_v11 }
 0x1f8   : > { %v888_v21 = vadd.f32 %v1379_v7, %v884_v20 }
 0x1fa   : > { %v889_v28 = vmul.f32 %v888_v21, %v1597_v24  ;;  %v896_v29 = vmul.f32 %v888_v21, %v1601_v25  ;;  %v903_v52 = vmul.f32 %v888_v21, %v1609_v37  ;;  %v910_v53 = vmul.f32 %v888_v21, %v1613_v38 }
 0x1fb   : > { %v917_v42 = vmax.f32 %v888_v21, 0.0 }
 0x1fc   : > { %v894_v63 = vadd.f32 %v893_v22, %v889_v28  ;;  %v901_v30 = vadd.f32 %v900_v23, %v896_v29  ;;  %v908_v0 = vadd.f32 %v907_v26, %v903_v52  ;;  %v915_v31 = vadd.f32 %v914_v27, %v910_v53  ;;  %v1353_v52 = vld [vmem:[%s1788_s14 + $0x8] sm:$0xff] }
 0x1fd   : > { %v1094_v44 = vpack.c.bf16 %v917_v42, %v917_v42  ;;  %1181 = vmatpush.bf16.msrb.mxu2 %v1353_v52 }
 0x1fe   : > { %v895_v32 = vmax.f32 %v894_v63, 0.0  ;;  %v902_v33 = vmax.f32 %v901_v30, 0.0  ;;  %v909_v34 = vmax.f32 %v908_v0, 0.0  ;;  %v916_v35 = vmax.f32 %v915_v31, 0.0  ;;  %v1352_v30 = vld [vmem:[%s1788_s14] sm:$0xff] }
 0x200   : > { %v925_v36 = vpack.c.bf16 %v895_v32, %v895_v32  ;;  %v954_v39 = vpack.c.bf16 %v902_v33, %v902_v33  ;;  %v971_v40 = vpack.c.bf16 %v909_v34, %v909_v34  ;;  %v988_v41 = vpack.c.bf16 %v916_v35, %v916_v35 }
 0x201   : > { %1182 = vmatpush.bf16.msrb.mxu2 %v1352_v30 }
 0x202   : > { %1310 = vmatmul.msk.bf16.vlgmr.msra.gmra.mxu0 %vm738_vm2, %v925_v36  ;;  %1311 = vmatmul.msk.bf16.vlgmr.msra.gmra.mxu1 %vm738_vm2, %v954_v39 }
 0x203   : > { %1312 = vmatmul.msk.bf16.vlgmr.msra.gmra.mxu2 %vm738_vm2, %v971_v40  ;;  %1313 = vmatmul.msk.bf16.vlgmr.msra.gmra.mxu3 %vm738_vm2, %v988_v41 }
 0x212   : > { %1322 = vmatmul.msk.bf16.vlgmr.msrb.gmra.mxu0 %vm738_vm2, %v1094_v44  ;;  %1331 = vmatmul.msk.bf16.vlgmr.msrb.gmra.mxu1 %vm738_vm2, %v1089_v43 }
 0x27f   : > { %v1706_v46 = vpop.f32.mrf.mxu0  ;;  %v1708_v47 = vpop.f32.mrf.mxu1 }
 0x280   : > { %v1012_v48 = vmul.f32 %v1382_v45, %v1708_v47  ;;  %v1008_v49 = vmul.f32 %v1382_v45, %v1706_v46  ;;  %v1024_v54 = vmul.f32 %v1706_v46, %v1597_v24  ;;  %v1025_v55 = vmul.f32 %v1708_v47, %v1601_v25 }
 0x282   : > { %v1013_v51 = vsel %vm738_vm2, %v1012_v48, 0.0  ;;  %v1009_v50 = vsel %vm738_vm2, %v1008_v49, 0.0  ;;  %v1026_v58 = vadd.f32 %v1025_v55, %v1024_v54 }
 0x283   : > { %1014 = vadd.xlane.f32.xlu0 %v1013_v51  ;;  %1010 = vadd.xlane.f32.xlu2 %v1009_v50 }
 0x286   : > { %v1718_v56 = vpop.f32.mrf.mxu2  ;;  %v1720_v57 = vpop.f32.mrf.mxu3 }
 0x287   : > { %v1027_v59 = vmul.f32 %v1718_v56, %v1609_v37  ;;  %v952_v60 = vpop.f32.mrf.mxu0  ;;  %v969_v61 = vpop.f32.mrf.mxu1  ;;  %v1020_v62 = vmul.f32 %v1382_v45, %v1720_v57  ;;  %v1016_v1 = vmul.f32 %v1382_v45, %v1718_v56  ;;  %v1029_v25 = vmul.f32 %v1720_v57, %v1613_v38 }
 0x289   : > { %v1028_v24 = vadd.f32 %v1027_v59, %v1026_v58  ;;  %v1021_v3 = vsel %vm738_vm2, %v1020_v62, 0.0  ;;  %v1017_v4 = vsel %vm738_vm2, %v1016_v1, 0.0 }
 0x28b   : > { %1022 = vadd.xlane.f32.xlu0 %v1021_v3  ;;  %1018 = vadd.xlane.f32.xlu2 %v1017_v4  ;;  %v1030_v37 = vadd.f32 %v1029_v25, %v1028_v24  ;;  %v1384_v3 = vld [vmem:[%s1785_s11] ss:$0 sm:$0xff] }
 0x28d   : > { %v1034_v5 = vmul.f32 %v1383_v2, %v1030_v37 }
 0x28e   : > { %v986_v6 = vpop.f32.mrf.mxu2  ;;  %v1003_v7 = vpop.f32.mrf.mxu3 }
 0x28f   : > { %v1035_v8 = vsel %vm738_vm2, %v1034_v5, 0.0  ;;  %v1123_v9 = vpop.f32.mrf.mxu0  ;;  %v1151_v10 = vpop.f32.mrf.mxu1  ;;  %v1386_v7 = vld [vmem:[%s1790_s16] ss:$0 sm:$0xff] }
 0x290   : > { %1036 = vadd.xlane.f32.xlu1 %v1035_v8  ;;  %v1734_v38 = vadd.f32 %v1151_v10, %v1123_v9 }
 0x297   : > { %v1125_v11 = vpop.f32.mrf.mxu0  ;;  %v1153_v12 = vpop.f32.mrf.mxu1 }
 0x298   : > { %v1387_v12 = vld [vmem:[#allocation4] ss:$0 sm:$0xff] }
 0x2f6   : > { %v1015_v13 = vpop.xlane.xlu0 %1014  ;;  %v1011_v14 = vpop.xlane.xlu2 %1010 }
 0x2fe   : > { %v1023_v15 = vpop.xlane.xlu0 %1022  ;;  %v1019_v16 = vpop.xlane.xlu2 %1018 }
 0x303   : > { %v1037_v17 = vpop.xlane.xlu1 %1036 }
 0x304   : > { %v1038_v18 = vadd.f32 %v1037_v17, %v1011_v14  ;;  %v1042_v19 = vadd.f32 %v1037_v17, %v1015_v13  ;;  %v1046_v20 = vadd.f32 %v1037_v17, %v1019_v16  ;;  %v1050_v21 = vadd.f32 %v1037_v17, %v1023_v15 }
 0x306   : > { %vm1039_vm7 = vcmp.gt.f32.partialorder %v1038_v18, 0.0  ;;  %v1040_v22 = vmul.f32 0.2, %v1038_v18  ;;  %vm1043_vm8 = vcmp.gt.f32.partialorder %v1042_v19, 0.0  ;;  %v1044_v23 = vmul.f32 0.2, %v1042_v19 }
 0x307   : > { %vm1047_vm9 = vcmp.gt.f32.partialorder %v1046_v20, 0.0  ;;  %v1048_v26 = vmul.f32 0.2, %v1046_v20  ;;  %v1052_v29 = vmul.f32 0.2, %v1050_v21  ;;  %vm1051_vm10 = vcmp.gt.f32.partialorder %v1050_v21, 0.0 }
 0x308   : > { %v1041_v27 = vsel %vm1039_vm7, %v1038_v18, %v1040_v22  ;;  %v1045_v28 = vsel %vm1043_vm8, %v1042_v19, %v1044_v23 }
 0x309   : > { %v1054_v53 = vmax.f32 %v1041_v27, %v1045_v28  ;;  %v1049_v63 = vsel %vm1047_vm9, %v1046_v20, %v1048_v26  ;;  %v1053_v31 = vsel %vm1051_vm10, %v1050_v21, %v1052_v29 }
 0x30b   : > { %v1055_v0 = vmax.f32 %v1054_v53, %v1049_v63 }
 0x30d   : > { %v1056_v32 = vmax.f32 %v1055_v0, %v1053_v31 }
 0x30f   : > { %v1057_v33 = vsub.f32 %v1041_v27, %v1056_v32  ;;  %v1060_v34 = vsub.f32 %v1045_v28, %v1056_v32  ;;  %v1063_v35 = vsub.f32 %v1049_v63, %v1056_v32  ;;  %v1066_v36 = vsub.f32 %v1053_v31, %v1056_v32 }
 0x311   : > { %v1058_v39 = vmul.f32 1.442695, %v1057_v33  ;;  %v1061_v40 = vmul.f32 1.442695, %v1060_v34  ;;  %v1064_v41 = vmul.f32 1.442695, %v1063_v35 }
 0x312   : > { %v1067_v42 = vmul.f32 1.442695, %v1066_v36 }
 0x313   : > { %1398 = vpow2.f32 %v1058_v39 }
 0x314   : > { %1400 = vpow2.f32 %v1061_v40 }
 0x315   : > { %1402 = vpow2.f32 %v1064_v41 }
 0x316   : > { %1404 = vpow2.f32 %v1067_v42 }
 0x319   : > { %v1399_v43 = vpop.eup %1398 }
 0x31a   : > { %v1401_v44 = vpop.eup %1400 }
 0x31b   : > { %v1069_v45 = vadd.f32 %v1401_v44, %v1399_v43  ;;  %v1403_v48 = vpop.eup %1402 }
 0x31c   : > { %v1405_v51 = vpop.eup %1404 }
 0x31d   : > { %v1070_v49 = vadd.f32 %v1403_v48, %v1069_v45 }
 0x31f   : > { %v1071_v50 = vadd.f32 %v1405_v51, %v1070_v49 }
 0x321   : > { %1406 = vrcp.f32 %v1071_v50 }
 0x327   : > { %v1407_v54 = vpop.eup %1406 }
 0x328   : > { %v1073_v55 = vmul.f32 %v1407_v54, %v1399_v43  ;;  %v1075_v58 = vmul.f32 %v1407_v54, %v1401_v44  ;;  %v1078_v59 = vmul.f32 %v1407_v54, %v1403_v48  ;;  %v1081_v62 = vmul.f32 %v1407_v54, %v1405_v51 }
 0x32a   : > { %v1074_v60 = vmul.f32 %v1073_v55, %v1706_v46  ;;  %v1076_v61 = vmul.f32 %v1075_v58, %v1708_v47  ;;  %v1079_v24 = vmul.f32 %v1078_v59, %v1718_v56  ;;  %v1082_v2 = vmul.f32 %v1081_v62, %v1720_v57  ;;  %v1385_v46 = vld [vmem:[%s1789_s15] ss:$0 sm:$0xff] }
 0x32c   : > { %v1077_v1 = vadd.f32 %v1076_v61, %v1074_v60 }
 0x32e   : > { %v1080_v25 = vadd.f32 %v1079_v24, %v1077_v1 }
 0x330   : > { %v1083_v4 = vadd.f32 %v1082_v2, %v1080_v25 }
 0x332   : > { %v1087_v37 = vadd.f32 %v1384_v3, %v1083_v4 }
 0x334   : > { %v1088_v5 = vmax.f32 %v1087_v37, 0.0 }
 0x336   : > { %v1155_v6 = vpack.c.bf16 %v1088_v5, %v1088_v5 }
 0x338   : > { %1340 = vmatmul.msk.bf16.vlgmr.msrb.gmra.mxu2 %vm738_vm2, %v1155_v6 }
 0x3bb   : > { %v1184_v47 = vpop.f32.mrf.mxu2 }
 0x3bc   : > { %v1188_v56 = vadd.f32 %v1184_v47, %v1734_v38 }
 0x3be   : > { %v1193_v57 = vadd.f32 %v1385_v46, %v1188_v56 }
 0x3c0   : > { %v1194_v8 = vmax.f32 %v1193_v57, 0.0 }
 0x3c2   : > { %v1199_v9 = vmul.f32 %v1386_v7, %v1194_v8 }
 0x3c3   : > { %v1186_v10 = vpop.f32.mrf.mxu2 }
 0x3c4   : > { %v1201_v11 = vsel %vm1200_vm11, %v1199_v9, 0.0 }
 0x3c5   : > { %1202 = vadd.xlane.f32.xlu1 %v1201_v11 }
 0x438   : > { %v1203_v38 = vpop.xlane.xlu1 %1202 }
 0x439   : > { %v1208_v13 = vadd.f32 %v1387_v12, %v1203_v38 }
 0x43b   : > { %1210 = vst.msk [vmem:[%s597_s19] sm:$0xff] %vm1209_vm12, %v1208_v13 }
 0x43c PF: > { %p28_p13 = scmp.ge.s32.totalorder %s1550_s21, 4   ;;  %s1816_s19 = smov %s1426_s1 }
 0x43d   : > { %s1817_s1 = smov %s1559_s23  ;;  %s1818_s20 = smov %s1550_s21 }
 0x43e   :  { %30 = sbr.rel (!%p28_p13) target bundleno = 16 (0x10), region = 164 }

</bundles_post_ra>
